<compile_context>
chip_gen: v7x
topology: tpu7x:2x2x1
jax: 0.10.0
libtpu: 0.0.40
codegen_flags: <defaults>
</compile_context>

<pallas_src>
import jax
import jax.numpy as jnp
from jax.experimental import pallas as pl
from jax.experimental.pallas import tpu as pltpu


C1_IN, C1_OUT = 10, 256      # Conv1d(10, 256, kernel_size=1)
C2_IN, C2_OUT = 512, 1024    # Conv2d(512, 1024, kernel_size=1)
S = C2_IN // C1_OUT          # channel split factor of the reshape bridge (= 2)


# ---------------------------------------------------------------------------
# Fused kernel: (conv1 matmul + bias) -> (conv2 matmul + bias), all in VMEM.
# ---------------------------------------------------------------------------
def _fused_forward_kernel(xm_ref, w1_ref, b1_ref, w2_ref, b2_ref, o_ref):
    # Stage 1: packed 1x1 Conv1d.  (M, S*C1_IN) @ (S*C1_IN, 512) + bias.
    # The block-diagonal packing of w1 makes `h` land directly in conv2's
    # channels-last order, so no in-kernel transpose/reshape is needed.
    h = jnp.dot(xm_ref[...], w1_ref[...], preferred_element_type=jnp.float32)
    h = h + b1_ref[...]
    # Stage 2: 1x1 Conv2d.  (M, 512) @ (512, 1024) + bias.
    z = jnp.dot(h, w2_ref[...], preferred_element_type=jnp.float32)
    # Lane-dense store: last dim 1024 is a multiple of 128 -> unmasked vst.
    o_ref[...] = (z + b2_ref[...]).astype(o_ref.dtype)


def fused_forward(xm, w1_big, b1_big, w2_arr, b2_row):
    """Single pallas_call for the whole forward; everything fits in VMEM."""
    M, K1 = xm.shape                 # (N*HW, S*C1_IN)
    K2, N2 = w2_arr.shape            # (512, 1024)
    return pl.pallas_call(
        _fused_forward_kernel,
        out_shape=jax.ShapeDtypeStruct((M, N2), xm.dtype),
        grid=(1,),
        in_specs=[
            pl.BlockSpec((M, K1), lambda i: (0, 0)),
            pl.BlockSpec((K1, K2), lambda i: (0, 0)),
            pl.BlockSpec((1, K2), lambda i: (0, 0)),
            pl.BlockSpec((K2, N2), lambda i: (0, 0)),
            pl.BlockSpec((1, N2), lambda i: (0, 0)),
        ],
        out_specs=pl.BlockSpec((M, N2), lambda i: (0, 0)),
        compiler_params=pltpu.CompilerParams(
            dimension_semantics=("arbitrary",)),
    )(xm, w1_big, b1_big, w2_arr, b2_row)


# ---------------------------------------------------------------------------
# Parameters: raw (PyTorch-shaped) + one-time packing for the fused kernel.
# ---------------------------------------------------------------------------
def init_params(key):
    k1, k2, k3, k4 = jax.random.split(key, 4)
    # Conv1d(10, 256, k=1): weight (256, 10, 1) -> stored as (256, 10)
    lim1 = 1.0 / (C1_IN ** 0.5)
    w1 = jax.random.uniform(k1, (C1_OUT, C1_IN), jnp.float32, -lim1, lim1)
    b1 = jax.random.uniform(k2, (C1_OUT,), jnp.float32, -lim1, lim1)
    # Conv2d(512, 1024, k=1): weight (1024, 512, 1, 1) -> stored as (1024, 512)
    lim2 = 1.0 / (C2_IN ** 0.5)
    w2 = jax.random.uniform(k3, (C2_OUT, C2_IN), jnp.float32, -lim2, lim2)
    b2 = jax.random.uniform(k4, (C2_OUT,), jnp.float32, -lim2, lim2)
    return w1, b1, w2, b2


def prepare_params(params):
    """One-time (init-time) packing: pre-transpose + fold the channel bridge.

    Packed channel order for conv2's input: j = r*C1_OUT + c  <->  c2 = c*S + r
    (c2 is the original Conv2d input channel, y-channel c at spatial offset r).
    """
    w1, b1, w2, b2 = params
    w1t = w1.T                                           # (10, 256)
    w2t = w2.T                                           # (512, 1024)
    # Block-diagonal conv1 weight: (S*C1_IN, C2_IN) = (20, 512), ~40 KiB.
    w1_big = jnp.zeros((S * C1_IN, C2_IN), w1.dtype)
    for r in range(S):
        w1_big = w1_big.at[r * C1_IN:(r + 1) * C1_IN,
                           r * C1_OUT:(r + 1) * C1_OUT].set(w1t)
    b1_big = jnp.tile(b1, S).reshape(1, C2_IN)           # (1, 512)
    # Row-interleaved conv2 weight matching the packed channel order.
    w2_arr = jnp.concatenate([w2t[r::S, :] for r in range(S)], axis=0)
    b2_row = b2.reshape(1, C2_OUT)                       # (1, 1024)
    return w1_big, b1_big, w2_arr, b2_row


# ---------------------------------------------------------------------------
# Forward
# ---------------------------------------------------------------------------
def model_forward(x, packed):
    w1_big, b1_big, w2_arr, b2_row = packed
    N, C, L = x.shape
    assert C == C1_IN
    HW = (C1_OUT * L) // C2_IN            # spatial size after the bridge
    assert HW * C2_IN == C1_OUT * L, "L must be a multiple of S for the bridge"

    # Pack the tiny input (~640 B) channels-last + spatial split:
    #   xm[n*HW + p, r*C1_IN + c] = x[n, c, r*HW + p]
    xm = (x.transpose(0, 2, 1)                 # (N, L, C1_IN)
            .reshape(N, S, HW, C1_IN)
            .transpose(0, 2, 1, 3)
            .reshape(N * HW, S * C1_IN))

    z = fused_forward(xm, w1_big, b1_big, w2_arr, b2_row)   # (N*HW, 1024)

    # Final NCHW flatten: out[n, o*HW + p] = z[n*HW + p, o]   (32 KiB permute)
    return z.reshape(N, HW, C2_OUT).transpose(0, 2, 1).reshape(N, C2_OUT * HW)


def model_forward_ref(x, params):
    """Pure-JAX reference (same bridge semantics) for correctness checking."""
    w1, b1, w2, b2 = params
    y = jnp.einsum("ncl,oc->nol", x, w1) + b1[None, :, None]   # Conv1d k=1
    N = y.shape[0]
    HW = (y.shape[1] * y.shape[2]) // C2_IN
    y = y.reshape(N, C2_IN, HW)           # bridge; only H*W matters post-flatten
    z = jnp.einsum("ncp,oc->nop", y, w2) + b2[None, :, None]   # Conv2d k=1
    return z.reshape(N, -1)


if __name__ == "__main__":
    key = jax.random.PRNGKey(0)
    kx, kp = jax.random.split(key)
    # Small input consistent with Conv1d(10, ...): (batch=2, channels=10, len=8)
    x = jax.random.normal(kx, (2, 10, 8), jnp.float32)

    raw_params = init_params(kp)
    packed = prepare_params(raw_params)    # one-time weight packing

    fwd = jax.jit(model_forward)
    out = jax.block_until_ready(fwd(x, packed))

    ref = model_forward_ref(x, raw_params)
    assert out.shape == (2, 4096), out.shape
    assert jnp.allclose(out, ref, atol=1e-4, rtol=1e-4)
    print("KERNEL_OK")
</pallas_src>

<mosaic_0001>
module attributes {stable_mosaic.version = 11 : i64} {
  func.func @_fused_forward_kernel(%arg0: i32, %arg1: memref<8x20xf32, #tpu.memory_space<vmem>>, %arg2: memref<20x512xf32, #tpu.memory_space<vmem>>, %arg3: memref<1x512xf32, #tpu.memory_space<vmem>>, %arg4: memref<512x1024xf32, #tpu.memory_space<vmem>>, %arg5: memref<1x1024xf32, #tpu.memory_space<vmem>>, %arg6: memref<8x1024xf32, #tpu.memory_space<vmem>>) attributes {dimension_semantics = [#tpu.dimension_semantics<arbitrary>], iteration_bounds = array<i64: 1>, scalar_prefetch = 0 : i64, scratch_operands = 0 : i64, tpu.core_type = #tpu.core_type<tc>, window_params = [{pipeline_mode = #tpu.pipeline_mode<synchronous>, transform_indices = @transform_0, window_bounds = array<i64: 8, 20>}, {pipeline_mode = #tpu.pipeline_mode<synchronous>, transform_indices = @transform_1, window_bounds = array<i64: 20, 512>}, {pipeline_mode = #tpu.pipeline_mode<synchronous>, transform_indices = @transform_2, window_bounds = array<i64: 1, 512>}, {pipeline_mode = #tpu.pipeline_mode<synchronous>, transform_indices = @transform_3, window_bounds = array<i64: 512, 1024>}, {pipeline_mode = #tpu.pipeline_mode<synchronous>, transform_indices = @transform_4, window_bounds = array<i64: 1, 1024>}, {pipeline_mode = #tpu.pipeline_mode<synchronous>, transform_indices = @transform_5, window_bounds = array<i64: 8, 1024>}]} {
    %c0 = arith.constant 0 : index
    %c0_0 = arith.constant 0 : index
    %0 = vector.load %arg1[%c0, %c0_0] : memref<8x20xf32, #tpu.memory_space<vmem>>, vector<8x20xf32>
    %c0_1 = arith.constant 0 : index
    %c0_2 = arith.constant 0 : index
    %1 = vector.load %arg2[%c0_1, %c0_2] : memref<20x512xf32, #tpu.memory_space<vmem>>, vector<20x512xf32>
    %cst = arith.constant dense<0.000000e+00> : vector<8x512xf32>
    %2 = tpu.matmul %0, %1, %cst {dimension_numbers = #tpu.dot_dimension_numbers<[1], [0], [0], [1], [0, 0, 1, 1], [], []>} : vector<8x20xf32>, vector<20x512xf32>, vector<8x512xf32> -> vector<8x512xf32>
    %c0_3 = arith.constant 0 : index
    %c0_4 = arith.constant 0 : index
    %3 = vector.load %arg3[%c0_3, %c0_4] : memref<1x512xf32, #tpu.memory_space<vmem>>, vector<1x512xf32>
    %4 = vector.broadcast %3 : vector<1x512xf32> to vector<8x512xf32>
    %5 = arith.addf %2, %4 : vector<8x512xf32>
    %c0_5 = arith.constant 0 : index
    %c0_6 = arith.constant 0 : index
    %6 = vector.load %arg4[%c0_5, %c0_6] : memref<512x1024xf32, #tpu.memory_space<vmem>>, vector<512x1024xf32>
    %cst_7 = arith.constant dense<0.000000e+00> : vector<8x1024xf32>
    %7 = tpu.matmul %5, %6, %cst_7 {dimension_numbers = #tpu.dot_dimension_numbers<[1], [0], [0], [1], [0, 0, 1, 1], [], []>} : vector<8x512xf32>, vector<512x1024xf32>, vector<8x1024xf32> -> vector<8x1024xf32>
    %c0_8 = arith.constant 0 : index
    %c0_9 = arith.constant 0 : index
    %8 = vector.load %arg5[%c0_8, %c0_9] : memref<1x1024xf32, #tpu.memory_space<vmem>>, vector<1x1024xf32>
    %9 = vector.broadcast %8 : vector<1x1024xf32> to vector<8x1024xf32>
    %10 = arith.addf %7, %9 : vector<8x1024xf32>
    %c0_10 = arith.constant 0 : index
    %c0_11 = arith.constant 0 : index
    %11 = vector.load %arg6[%c0_10, %c0_11] : memref<8x1024xf32, #tpu.memory_space<vmem>>, vector<8x1024xf32>
    tpu.vector_store %arg6[%c0_10, %c0_11], %10 {strides = array<i32>} : memref<8x1024xf32, #tpu.memory_space<vmem>>, vector<8x1024xf32>,
    return
  }
  func.func @transform_0(%arg0: i32) -> (i32, i32) {
    %c0_i32 = arith.constant 0 : i32
    %c0_i32_0 = arith.constant 0 : i32
    %c0_i32_1 = arith.constant 0 : i32
    return %c0_i32, %c0_i32_0 : i32, i32
  }
  func.func @transform_1(%arg0: i32) -> (i32, i32) {
    %c0_i32 = arith.constant 0 : i32
    %c0_i32_0 = arith.constant 0 : i32
    %c0_i32_1 = arith.constant 0 : i32
    return %c0_i32, %c0_i32_0 : i32, i32
  }
  func.func @transform_2(%arg0: i32) -> (i32, i32) {
    %c0_i32 = arith.constant 0 : i32
    %c0_i32_0 = arith.constant 0 : i32
    %c0_i32_1 = arith.constant 0 : i32
    return %c0_i32, %c0_i32_0 : i32, i32
  }
  func.func @transform_3(%arg0: i32) -> (i32, i32) {
    %c0_i32 = arith.constant 0 : i32
    %c0_i32_0 = arith.constant 0 : i32
    %c0_i32_1 = arith.constant 0 : i32
    return %c0_i32, %c0_i32_0 : i32, i32
  }
  func.func @transform_4(%arg0: i32) -> (i32, i32) {
    %c0_i32 = arith.constant 0 : i32
    %c0_i32_0 = arith.constant 0 : i32
    %c0_i32_1 = arith.constant 0 : i32
    return %c0_i32, %c0_i32_0 : i32, i32
  }
  func.func @transform_5(%arg0: i32) -> (i32, i32) {
    %c0_i32 = arith.constant 0 : i32
    %c0_i32_0 = arith.constant 0 : i32
    %c0_i32_1 = arith.constant 0 : i32
    return %c0_i32, %c0_i32_0 : i32, i32
  }
}

</mosaic_0001>

<bundles_post_ra>
// kernel: model_forward.1
= control target key start
LH: loop header
LB: loop body
LE: loop exit
PB: predicated region body
PF: predicated region fallthrough
CT: control target
= control target key end

     0   :  { %10 = vsyncpa [#allocation3], 0  ;;  %s2233_s0 = inlined_call_operand.vmem [shape: f32[8,20], index: 0, kind: input, shape index: {}]   ;;  %s2234_s1 = inlined_call_operand.hbm [shape: f32[20,512], index: 1, kind: input, shape index: {}]   ;;  %s2235_s2 = inlined_call_operand.hbm [shape: f32[1,512], index: 2, kind: input, shape index: {}]   ;;  %s2236_s3 = inlined_call_operand.hbm [shape: f32[512,1024], index: 3, kind: input, shape index: {}]   ;;  %s2237_s4 = inlined_call_operand.hbm [shape: f32[1,1024], index: 4, kind: input, shape index: {}]   ;;  %s2238_s5 = inlined_call_operand.vmem [shape: f32[8,1024], index: 5, kind: output, shape index: {}]  }
   0x1   :  { %11 = vsyncpa [#allocation5], 0 }
   0x2   :  { %12 = vsyncpa [#allocation8], 0  ;;  %s2047_s18 = smov [#allocation4]   ;;  %s2048_s20 = smov [#allocation2]  }
   0x3   :  { %s33_s19 = sshll.u32 %s2047_s18, 4  ;;  %s20_s21 = sshll.u32 %s2048_s20, 4  ;;  %s34_s19 = int_to_ptr.vmem [resolvable:$true] %s33_s19  ;;  %s2086_s21 = int_to_ptr.vmem [resolvable:$true] %s20_s21 }
   0x4   :  { %s1953_s24 = scalar_lea.hbm %s2235_s2, 64 }
   0x5   :  { %p1954_p0 = scmp.ne.s32.totalorder %s2235_s2, %s1953_s24  ;;  %p1957_p1 = scmp.lt.u32.totalorder %s1953_s24, %s2235_s2 }
   0x7   :  { %p1959_p2 = pnand %p1957_p1, %p1954_p0 }
   0x9   :  { %1962 = shalt.err (!%p1959_p2)
}
   0xa   :  { %s1963_s29 = scalar_lea.vmem %s34_s19, 64  ;;  %p1968_p4 = scmp.lt.s32.totalorder %s34_s19, %s34_s19 }
   0xb   :  { %p1964_p3 = scmp.ne.s32.totalorder %s34_s19, %s1963_s29  ;;  %p1969_p5 = scmp.lt.s32.totalorder %s1963_s29, %s1963_s29 }
   0xd   :  { %p1970_p6 = por %p1969_p5, %p1968_p4 }
   0xf   :  { %p1971_p7 = pnand %p1970_p6, %p1964_p3 }
  0x11   :  { %1974 = shalt.err (!%p1971_p7)
}
  0x12   :  { %36 = dma.hbm_to_vmem [thread:$0]  %s2235_s2, 64, %s34_s19, [#allocation5]  }
  0x13   :  { %s1975_s9 = scalar_lea.hbm %s2234_s1, 1536 }
  0x14   :  { %p1976_p8 = scmp.ne.s32.totalorder %s2234_s1, %s1975_s9  ;;  %p1979_p9 = scmp.lt.u32.totalorder %s1975_s9, %s2234_s1 }
  0x16   :  { %p1981_p10 = pnand %p1979_p9, %p1976_p8 }
  0x18   :  { %1984 = shalt.err (!%p1981_p10)
}
  0x19   :  { %s1985_s14 = scalar_lea.vmem %s2086_s21, 1536  ;;  %p1990_p12 = scmp.lt.s32.totalorder %s2086_s21, %s2086_s21 }
  0x1a   :  { %p1986_p11 = scmp.ne.s32.totalorder %s2086_s21, %s1985_s14  ;;  %p1991_p13 = scmp.lt.s32.totalorder %s1985_s14, %s1985_s14 }
  0x1c   :  { %p1992_p0 = por %p1991_p13, %p1990_p12 }
  0x1e   :  { %p1993_p1 = pnand %p1992_p0, %p1986_p11 }
  0x20   :  { %1996 = shalt.err (!%p1993_p1)
}
  0x21   :  { %s2049_s2 = smov 512   ;;  %s2050_s15 = smov 32  }
  0x22   :  { %26 = dma.hbm_to_vmem [thread:$0]  %s2234_s1, 1536, %s2086_s21, [#allocation3], %s2049_s2, %s2049_s2, %s2050_s15  }
  0x23   :  { %s2051_s18 = smov [#allocation6]   ;;  %s1997_s23 = scalar_lea.hbm %s2236_s3, 65536 }
  0x24   :  { %s42_s19 = sshll.u32 %s2051_s18, 4  ;;  %p1998_p2 = scmp.ne.s32.totalorder %s2236_s3, %s1997_s23  ;;  %s43_s19 = int_to_ptr.vmem [resolvable:$true] %s42_s19 }
  0x25   :  { %p2001_p3 = scmp.lt.u32.totalorder %s1997_s23, %s2236_s3 }
  0x27   :  { %p2003_p4 = pnand %p2001_p3, %p1998_p2 }
  0x29   :  { %2006 = shalt.err (!%p2003_p4)
}
  0x2a   :  { %s2007_s28 = scalar_lea.vmem %s43_s19, 65536  ;;  %p2012_p6 = scmp.lt.s32.totalorder %s43_s19, %s43_s19 }
  0x2b   :  { %p2008_p5 = scmp.ne.s32.totalorder %s43_s19, %s2007_s28  ;;  %p2013_p7 = scmp.lt.s32.totalorder %s2007_s28, %s2007_s28 }
  0x2d   :  { %p2014_p8 = por %p2013_p7, %p2012_p6 }
  0x2f   :  { %p2015_p9 = pnand %p2014_p8, %p2008_p5 }
  0x31   :  { %2018 = shalt.err (!%p2015_p9)
}
  0x32   :  { %s2052_s1 = smov 1024   ;;  %s2053_s21 = smov 64  }
  0x33   :  { %48 = dma.hbm_to_vmem [thread:$0]  %s2236_s3, 65536, %s43_s19, [#allocation5], %s2052_s1, %s2052_s1, %s2053_s21  }
  0x34   :  { %s2054_s6 = smov [#allocation7]   ;;  %s2019_s10 = scalar_lea.hbm %s2237_s4, 128 }
  0x35   :  { %s55_s7 = sshll.u32 %s2054_s6, 4  ;;  %p2020_p10 = scmp.ne.s32.totalorder %s2237_s4, %s2019_s10  ;;  %s56_s7 = int_to_ptr.vmem [resolvable:$true] %s55_s7 }
  0x36   :  { %p2023_p11 = scmp.lt.u32.totalorder %s2019_s10, %s2237_s4 }
  0x38   :  { %p2025_p12 = pnand %p2023_p11, %p2020_p10 }
  0x3a   :  { %2028 = shalt.err (!%p2025_p12)
}
  0x3b   :  { %s2029_s2 = scalar_lea.vmem %s56_s7, 128  ;;  %p2034_p0 = scmp.lt.s32.totalorder %s56_s7, %s56_s7 }
  0x3c   :  { %p2030_p13 = scmp.ne.s32.totalorder %s56_s7, %s2029_s2  ;;  %p2035_p1 = scmp.lt.s32.totalorder %s2029_s2, %s2029_s2 }
  0x3e   :  { %p2036_p2 = por %p2035_p1, %p2034_p0 }
  0x40   :  { %p2037_p3 = pnand %p2036_p2, %p2030_p13 }
  0x42   :  { %2040 = shalt.err (!%p2037_p3)
}
  0x43   :  { %58 = dma.hbm_to_vmem [thread:$0]  %s2237_s4, 128, %s56_s7, [#allocation8]  }
  0x44   :  { %2041 = dma.done.wait [#allocation3], 1536  }
  0x45   :  { %2042 = vsyncadd [#allocation3], 4294965760 }
  0x46   :  { %2043 = dma.done.wait [#allocation5], 65600  }
  0x47   :  { %2044 = vsyncadd [#allocation5], 4294901696 }
  0x48   :  { %2045 = dma.done.wait [#allocation8], 128  }
  0x49   :  { %2046 = vsyncadd [#allocation8], 4294967168  ;;  %v2055_v0 = vmov 0.0   ;;  %v73_v1 = vld [vmem:[#allocation2 + $0x8] sm:$0xff]  ;;  %v72_v3 = vld [vmem:[#allocation2] sm:$0xff]  ;;  %vm110_vm0 = vcmask 1043456  }
  0x4a   :  { %187 = vmatprep.mubr.f32.mxu0 %v2055_v0  ;;  %258 = vmatprep.mubr.f32.mxu1 %v2055_v0  ;;  %v77_v2 = vld [vmem:[#allocation2 + $0x28] sm:$0xff]  ;;  %v76_v5 = vld [vmem:[#allocation2 + $0x20] sm:$0xff]  ;;  %v75_v8 = vld [vmem:[#allocation2 + $0x18] sm:$0xff]  ;;  %vm106_vm1 = vcmask 162816  }
  0x4b   :  { %v1408_v4 = vpack.c.bf16 %v77_v2, %v73_v1  ;;  %v1410_v6 = vpack.c.bf16 %v76_v5, %v72_v3  ;;  %v81_v7 = vld [vmem:[#allocation2 + $0x48] sm:$0xf]  ;;  %v79_v9 = vld [vmem:[#allocation2 + $0x38] sm:$0xff]  ;;  %v80_v10 = vld [vmem:[#allocation2 + $0x40] sm:$0xf] }
  0x4c   :  { %v1412_v11 = vpack.c.bf16 %v79_v9, %v75_v8  ;;  %v74_v12 = vld [vmem:[#allocation2 + $0x10] sm:$0xff]  ;;  %v71_v14 = vld [vmem:[%s2233_s0] sm:$0xff]  ;;  %v83_v16 = vld [vmem:[#allocation2 + $0x58] sm:$0xf] }
  0x4d   :  { %1409 = vmatprep.subr.bf16.mxu0 %v1408_v4  ;;  %v78_v13 = vld [vmem:[#allocation2 + $0x30] sm:$0xff]  ;;  %v268_v21 = vld [vmem:[#allocation6 + $0x18] sm:$0xff]  ;;  %v265_v23 = vld [vmem:[#allocation6] sm:$0xff] }
  0x4e   :  { %1411 = vmatpush1.bf16.msra.mxu0 %v1410_v6  ;;  %v1414_v15 = vpack.c.bf16 %v78_v13, %v74_v12  ;;  %v266_v17 = vld [vmem:[#allocation6 + $0x8] sm:$0xff]  ;;  %1413 = vmatprep.subr.bf16.mxu1 %v1412_v11  ;;  %v276_v22 = vld [vmem:[#allocation6 + $0x58] sm:$0xff]  ;;  %v273_v24 = vld [vmem:[#allocation6 + $0x40] sm:$0xff] }
  0x4f   :  { %v274_v18 = vld [vmem:[#allocation6 + $0x48] sm:$0xff]  ;;  %1402 = vmatprep.subr.msk.mxu0 %vm110_vm0, %v81_v7  ;;  %v267_v25 = vld [vmem:[#allocation6 + $0x10] sm:$0xff]  ;;  %v1544_v27 = vpack.c.bf16 %v276_v22, %v268_v21  ;;  %v1418_v28 = vpack.c.bf16 %v273_v24, %v265_v23  ;;  %v284_v31 = vld [vmem:[#allocation6 + $0x98] sm:$0xff] }
  0x50   :  { %v82_v19 = vld [vmem:[#allocation2 + $0x50] sm:$0xf]  ;;  %v1416_v20 = vpack.c.bf16 %v274_v18, %v266_v17  ;;  %1415 = vmatpush1.bf16.msra.mxu1 %v1414_v15  ;;  %v275_v26 = vld [vmem:[#allocation6 + $0x50] sm:$0xff]  ;;  %v292_v34 = vld [vmem:[#allocation6 + $0xd8] sm:$0xff] }
  0x51   :  { %1405 = vmatprep.subr.msk.mxu1 %vm110_vm0, %v83_v16  ;;  %v282_v29 = vld [vmem:[#allocation6 + $0x88] sm:$0xff]  ;;  %v1546_v32 = vpack.c.bf16 %v275_v26, %v267_v25  ;;  %v281_v35 = vld [vmem:[#allocation6 + $0x80] sm:$0xff]  ;;  %v1548_v37 = vpack.c.bf16 %v292_v34, %v284_v31  ;;  %v283_v38 = vld [vmem:[#allocation6 + $0x90] sm:$0xff] }
  0x52   :  { %v290_v30 = vld [vmem:[#allocation6 + $0xc8] sm:$0xff]  ;;  %1403 = vmatpush1.msk.msra.mxu0 %vm110_vm0, %v80_v10  ;;  %v289_v36 = vld [vmem:[#allocation6 + $0xc0] sm:$0xff]  ;;  %v291_v39 = vld [vmem:[#allocation6 + $0xd0] sm:$0xff] }
  0x53   :  { %v1420_v33 = vpack.c.bf16 %v290_v30, %v282_v29  ;;  %1404 = vmatmul.mubr.msk.f32.vlgmr.msra.gmra.mrb[0].mxu0 %vm106_vm1, %v71_v14  ;;  %1417 = vmatprep.subr.bf16.mxu0 %v1416_v20  ;;  %v298_v40 = vld [vmem:[#allocation6 + $0x108] sm:$0xff]  ;;  %v1422_v41 = vpack.c.bf16 %v289_v36, %v281_v35  ;;  %v300_v43 = vld [vmem:[#allocation6 + $0x118] sm:$0xff]  ;;  %v297_v46 = vld [vmem:[#allocation6 + $0x100] sm:$0xff]  ;;  %v1550_v48 = vpack.c.bf16 %v291_v39, %v283_v38 }
  0x54   :  { %1406 = vmatpush1.msk.msra.mxu1 %vm110_vm0, %v82_v19  ;;  %1419 = vmatpush1.bf16.msra.mxu0 %v1418_v28  ;;  %v306_v42 = vld [vmem:[#allocation6 + $0x148] sm:$0xff]  ;;  %v308_v44 = vld [vmem:[#allocation6 + $0x158] sm:$0xff]  ;;  %v305_v47 = vld [vmem:[#allocation6 + $0x140] sm:$0xff] }
  0x55   :  { %1407 = vmatmul.mubr.msk.f32.vlgmr.msra.gmra.mrb[0].mxu1 %vm106_vm1, %v71_v14  ;;  %1545 = vmatprep.subr.bf16.mxu1 %v1544_v27  ;;  %v1424_v45 = vpack.c.bf16 %v306_v42, %v298_v40  ;;  %v314_v49 = vld [vmem:[#allocation6 + $0x188] sm:$0xff]  ;;  %v1552_v51 = vpack.c.bf16 %v308_v44, %v300_v43  ;;  %v299_v52 = vld [vmem:[#allocation6 + $0x110] sm:$0xff]  ;;  %v1426_v54 = vpack.c.bf16 %v305_v47, %v297_v46  ;;  %v316_v55 = vld [vmem:[#allocation6 + $0x198] sm:$0xff] }
  0x56   :  { %1547 = vmatpush1.bf16.msra.mxu1 %v1546_v32  ;;  %1421 = vmatprep.subr.bf16.mxu0 %v1420_v33  ;;  %v322_v50 = vld [vmem:[#allocation6 + $0x1c8] sm:$0xff]  ;;  %v307_v53 = vld [vmem:[#allocation6 + $0x150] sm:$0xff]  ;;  %v324_v56 = vld [vmem:[#allocation6 + $0x1d8] sm:$0xff] }
  0x57   :  { %1549 = vmatprep.subr.bf16.mxu1 %v1548_v37  ;;  %v1428_v57 = vpack.c.bf16 %v322_v50, %v314_v49  ;;  %v313_v58 = vld [vmem:[#allocation6 + $0x180] sm:$0xff]  ;;  %v1554_v60 = vpack.c.bf16 %v307_v53, %v299_v52  ;;  %v330_v61 = vld [vmem:[#allocation6 + $0x208] sm:$0xff]  ;;  %v1556_v63 = vpack.c.bf16 %v324_v56, %v316_v55  ;;  %v315_v0 = vld [vmem:[#allocation6 + $0x190] sm:$0xff] }
  0x58   :  { %1423 = vmatpush1.bf16.msra.mxu0 %v1422_v41  ;;  %v321_v59 = vld [vmem:[#allocation6 + $0x1c0] sm:$0xff]  ;;  %v338_v62 = vld [vmem:[#allocation6 + $0x248] sm:$0xff]  ;;  %v323_v1 = vld [vmem:[#allocation6 + $0x1d0] sm:$0xff] }
  0x59   :  { %1425 = vmatprep.subr.bf16.mxu0 %v1424_v45  ;;  %v1430_v2 = vpack.c.bf16 %v321_v59, %v313_v58  ;;  %v332_v3 = vld [vmem:[#allocation6 + $0x218] sm:$0xff]  ;;  %v1432_v5 = vpack.c.bf16 %v338_v62, %v330_v61  ;;  %v329_v6 = vld [vmem:[#allocation6 + $0x200] sm:$0xff]  ;;  %v1558_v8 = vpack.c.bf16 %v323_v1, %v315_v0  ;;  %v346_v9 = vld [vmem:[#allocation6 + $0x288] sm:$0xff] }
  0x5a   :  { %1551 = vmatpush1.bf16.msra.mxu1 %v1550_v48  ;;  %v340_v4 = vld [vmem:[#allocation6 + $0x258] sm:$0xff]  ;;  %v337_v7 = vld [vmem:[#allocation6 + $0x240] sm:$0xff]  ;;  %v354_v10 = vld [vmem:[#allocation6 + $0x2c8] sm:$0xff] }
  0x5b   :  { %1553 = vmatprep.subr.bf16.mxu1 %v1552_v51  ;;  %v1560_v11 = vpack.c.bf16 %v340_v4, %v332_v3  ;;  %v331_v12 = vld [vmem:[#allocation6 + $0x210] sm:$0xff]  ;;  %v1434_v14 = vpack.c.bf16 %v337_v7, %v329_v6  ;;  %v348_v15 = vld [vmem:[#allocation6 + $0x298] sm:$0xff]  ;;  %v1436_v17 = vpack.c.bf16 %v354_v10, %v346_v9  ;;  %v345_v18 = vld [vmem:[#allocation6 + $0x280] sm:$0xff] }
  0x5c   :  { %1427 = vmatpush1.bf16.msra.mxu0 %v1426_v54  ;;  %v339_v13 = vld [vmem:[#allocation6 + $0x250] sm:$0xff]  ;;  %v356_v16 = vld [vmem:[#allocation6 + $0x2d8] sm:$0xff]  ;;  %v353_v19 = vld [vmem:[#allocation6 + $0x2c0] sm:$0xff] }
  0x5d   :  { %1429 = vmatprep.subr.bf16.mxu0 %v1428_v57  ;;  %v1562_v20 = vpack.c.bf16 %v339_v13, %v331_v12  ;;  %v362_v21 = vld [vmem:[#allocation6 + $0x308] sm:$0xff]  ;;  %v1564_v23 = vpack.c.bf16 %v356_v16, %v348_v15  ;;  %v347_v24 = vld [vmem:[#allocation6 + $0x290] sm:$0xff]  ;;  %v1438_v26 = vpack.c.bf16 %v353_v19, %v345_v18  ;;  %v364_v27 = vld [vmem:[#allocation6 + $0x318] sm:$0xff] }
  0x5e   :  { %1555 = vmatpush1.bf16.msra.mxu1 %v1554_v60  ;;  %v370_v22 = vld [vmem:[#allocation6 + $0x348] sm:$0xff]  ;;  %v355_v25 = vld [vmem:[#allocation6 + $0x2d0] sm:$0xff]  ;;  %v372_v28 = vld [vmem:[#allocation6 + $0x358] sm:$0xff] }
  0x5f   :  { %1557 = vmatprep.subr.bf16.mxu1 %v1556_v63  ;;  %v1440_v29 = vpack.c.bf16 %v370_v22, %v362_v21  ;;  %v361_v30 = vld [vmem:[#allocation6 + $0x300] sm:$0xff]  ;;  %v1566_v32 = vpack.c.bf16 %v355_v25, %v347_v24  ;;  %v378_v33 = vld [vmem:[#allocation6 + $0x388] sm:$0xff]  ;;  %v1568_v35 = vpack.c.bf16 %v372_v28, %v364_v27  ;;  %v363_v36 = vld [vmem:[#allocation6 + $0x310] sm:$0xff] }
  0x60   :  { %1431 = vmatpush1.bf16.msra.mxu0 %v1430_v2  ;;  %v369_v31 = vld [vmem:[#allocation6 + $0x340] sm:$0xff]  ;;  %v386_v34 = vld [vmem:[#allocation6 + $0x3c8] sm:$0xff]  ;;  %v371_v37 = vld [vmem:[#allocation6 + $0x350] sm:$0xff] }
  0x61   :  { %1433 = vmatprep.subr.bf16.mxu0 %v1432_v5  ;;  %v1442_v38 = vpack.c.bf16 %v369_v31, %v361_v30  ;;  %v380_v39 = vld [vmem:[#allocation6 + $0x398] sm:$0xff]  ;;  %v1444_v41 = vpack.c.bf16 %v386_v34, %v378_v33  ;;  %v377_v42 = vld [vmem:[#allocation6 + $0x380] sm:$0xff]  ;;  %v1570_v44 = vpack.c.bf16 %v371_v37, %v363_v36  ;;  %v394_v45 = vld [vmem:[#allocation6 + $0x408] sm:$0xff] }
  0x62   :  { %1559 = vmatpush1.bf16.msra.mxu1 %v1558_v8  ;;  %v388_v40 = vld [vmem:[#allocation6 + $0x3d8] sm:$0xff]  ;;  %v385_v43 = vld [vmem:[#allocation6 + $0x3c0] sm:$0xff]  ;;  %v402_v46 = vld [vmem:[#allocation6 + $0x448] sm:$0xff] }
  0x63   :  { %1561 = vmatprep.subr.bf16.mxu1 %v1560_v11  ;;  %v1572_v47 = vpack.c.bf16 %v388_v40, %v380_v39  ;;  %v379_v48 = vld [vmem:[#allocation6 + $0x390] sm:$0xff]  ;;  %v1446_v50 = vpack.c.bf16 %v385_v43, %v377_v42  ;;  %v396_v51 = vld [vmem:[#allocation6 + $0x418] sm:$0xff]  ;;  %v1448_v53 = vpack.c.bf16 %v402_v46, %v394_v45  ;;  %v393_v54 = vld [vmem:[#allocation6 + $0x400] sm:$0xff] }
  0x64   :  { %1435 = vmatpush1.bf16.msra.mxu0 %v1434_v14  ;;  %v387_v49 = vld [vmem:[#allocation6 + $0x3d0] sm:$0xff]  ;;  %v404_v52 = vld [vmem:[#allocation6 + $0x458] sm:$0xff]  ;;  %v401_v55 = vld [vmem:[#allocation6 + $0x440] sm:$0xff] }
  0x65   :  { %1437 = vmatprep.subr.bf16.mxu0 %v1436_v17  ;;  %v1574_v56 = vpack.c.bf16 %v387_v49, %v379_v48  ;;  %v410_v57 = vld [vmem:[#allocation6 + $0x488] sm:$0xff]  ;;  %v1576_v59 = vpack.c.bf16 %v404_v52, %v396_v51  ;;  %v395_v60 = vld [vmem:[#allocation6 + $0x410] sm:$0xff]  ;;  %v1450_v62 = vpack.c.bf16 %v401_v55, %v393_v54  ;;  %v412_v63 = vld [vmem:[#allocation6 + $0x498] sm:$0xff] }
  0x66   :  { %1563 = vmatpush1.bf16.msra.mxu1 %v1562_v20  ;;  %v418_v58 = vld [vmem:[#allocation6 + $0x4c8] sm:$0xff]  ;;  %v403_v61 = vld [vmem:[#allocation6 + $0x450] sm:$0xff]  ;;  %v420_v0 = vld [vmem:[#allocation6 + $0x4d8] sm:$0xff] }
  0x67   :  { %1565 = vmatprep.subr.bf16.mxu1 %v1564_v23  ;;  %v1452_v1 = vpack.c.bf16 %v418_v58, %v410_v57  ;;  %v409_v2 = vld [vmem:[#allocation6 + $0x480] sm:$0xff]  ;;  %v1578_v4 = vpack.c.bf16 %v403_v61, %v395_v60  ;;  %v426_v5 = vld [vmem:[#allocation6 + $0x508] sm:$0xff]  ;;  %v1580_v7 = vpack.c.bf16 %v420_v0, %v412_v63  ;;  %v411_v8 = vld [vmem:[#allocation6 + $0x490] sm:$0xff] }
  0x68   :  { %1439 = vmatpush1.bf16.msra.mxu0 %v1438_v26  ;;  %v417_v3 = vld [vmem:[#allocation6 + $0x4c0] sm:$0xff]  ;;  %v434_v6 = vld [vmem:[#allocation6 + $0x548] sm:$0xff]  ;;  %v419_v9 = vld [vmem:[#allocation6 + $0x4d0] sm:$0xff] }
  0x69   :  { %1441 = vmatprep.subr.bf16.mxu0 %v1440_v29  ;;  %v1454_v10 = vpack.c.bf16 %v417_v3, %v409_v2  ;;  %v428_v11 = vld [vmem:[#allocation6 + $0x518] sm:$0xff]  ;;  %v1456_v13 = vpack.c.bf16 %v434_v6, %v426_v5  ;;  %v425_v14 = vld [vmem:[#allocation6 + $0x500] sm:$0xff]  ;;  %v1582_v16 = vpack.c.bf16 %v419_v9, %v411_v8  ;;  %v442_v17 = vld [vmem:[#allocation6 + $0x588] sm:$0xff] }
  0x6a   :  { %1567 = vmatpush1.bf16.msra.mxu1 %v1566_v32  ;;  %v436_v12 = vld [vmem:[#allocation6 + $0x558] sm:$0xff]  ;;  %v433_v15 = vld [vmem:[#allocation6 + $0x540] sm:$0xff]  ;;  %v450_v18 = vld [vmem:[#allocation6 + $0x5c8] sm:$0xff] }
  0x6b   :  { %1569 = vmatprep.subr.bf16.mxu1 %v1568_v35  ;;  %v1584_v19 = vpack.c.bf16 %v436_v12, %v428_v11  ;;  %v427_v20 = vld [vmem:[#allocation6 + $0x510] sm:$0xff]  ;;  %v1458_v22 = vpack.c.bf16 %v433_v15, %v425_v14  ;;  %v444_v23 = vld [vmem:[#allocation6 + $0x598] sm:$0xff]  ;;  %v1460_v25 = vpack.c.bf16 %v450_v18, %v442_v17  ;;  %v441_v26 = vld [vmem:[#allocation6 + $0x580] sm:$0xff] }
  0x6c   :  { %1443 = vmatpush1.bf16.msra.mxu0 %v1442_v38  ;;  %v435_v21 = vld [vmem:[#allocation6 + $0x550] sm:$0xff]  ;;  %v452_v24 = vld [vmem:[#allocation6 + $0x5d8] sm:$0xff]  ;;  %v449_v27 = vld [vmem:[#allocation6 + $0x5c0] sm:$0xff] }
  0x6d   :  { %1445 = vmatprep.subr.bf16.mxu0 %v1444_v41  ;;  %v1586_v28 = vpack.c.bf16 %v435_v21, %v427_v20  ;;  %v458_v29 = vld [vmem:[#allocation6 + $0x608] sm:$0xff]  ;;  %v1588_v31 = vpack.c.bf16 %v452_v24, %v444_v23  ;;  %v443_v32 = vld [vmem:[#allocation6 + $0x590] sm:$0xff]  ;;  %v1462_v34 = vpack.c.bf16 %v449_v27, %v441_v26  ;;  %v460_v35 = vld [vmem:[#allocation6 + $0x618] sm:$0xff]  ;;  %v86_v24 = vlaneseq }
  0x6e   :  { %1571 = vmatpush1.bf16.msra.mxu1 %v1570_v44  ;;  %v466_v30 = vld [vmem:[#allocation6 + $0x648] sm:$0xff]  ;;  %v451_v33 = vld [vmem:[#allocation6 + $0x5d0] sm:$0xff]  ;;  %v468_v36 = vld [vmem:[#allocation6 + $0x658] sm:$0xff] }
  0x6f   :  { %1573 = vmatprep.subr.bf16.mxu1 %v1572_v47  ;;  %v1464_v37 = vpack.c.bf16 %v466_v30, %v458_v29  ;;  %v457_v38 = vld [vmem:[#allocation6 + $0x600] sm:$0xff]  ;;  %v1590_v40 = vpack.c.bf16 %v451_v33, %v443_v32  ;;  %v474_v41 = vld [vmem:[#allocation6 + $0x688] sm:$0xff]  ;;  %v1592_v43 = vpack.c.bf16 %v468_v36, %v460_v35  ;;  %v459_v44 = vld [vmem:[#allocation6 + $0x610] sm:$0xff] }
  0x70   :  { %1447 = vmatpush1.bf16.msra.mxu0 %v1446_v50  ;;  %v465_v39 = vld [vmem:[#allocation6 + $0x640] sm:$0xff]  ;;  %v482_v42 = vld [vmem:[#allocation6 + $0x6c8] sm:$0xff]  ;;  %v467_v45 = vld [vmem:[#allocation6 + $0x650] sm:$0xff] }
  0x71   :  { %1449 = vmatprep.subr.bf16.mxu0 %v1448_v53  ;;  %v1466_v46 = vpack.c.bf16 %v465_v39, %v457_v38  ;;  %v476_v47 = vld [vmem:[#allocation6 + $0x698] sm:$0xff]  ;;  %v1468_v49 = vpack.c.bf16 %v482_v42, %v474_v41  ;;  %v473_v50 = vld [vmem:[#allocation6 + $0x680] sm:$0xff]  ;;  %v1594_v52 = vpack.c.bf16 %v467_v45, %v459_v44  ;;  %v490_v53 = vld [vmem:[#allocation6 + $0x708] sm:$0xff] }
  0x72   :  { %1575 = vmatpush1.bf16.msra.mxu1 %v1574_v56  ;;  %v484_v48 = vld [vmem:[#allocation6 + $0x6d8] sm:$0xff]  ;;  %v481_v51 = vld [vmem:[#allocation6 + $0x6c0] sm:$0xff]  ;;  %v498_v54 = vld [vmem:[#allocation6 + $0x748] sm:$0xff] }
  0x73   :  { %1577 = vmatprep.subr.bf16.mxu1 %v1576_v59  ;;  %v1596_v55 = vpack.c.bf16 %v484_v48, %v476_v47  ;;  %v475_v56 = vld [vmem:[#allocation6 + $0x690] sm:$0xff]  ;;  %v1470_v58 = vpack.c.bf16 %v481_v51, %v473_v50  ;;  %v492_v59 = vld [vmem:[#allocation6 + $0x718] sm:$0xff]  ;;  %v1472_v61 = vpack.c.bf16 %v498_v54, %v490_v53  ;;  %v497_v63 = vld [vmem:[#allocation6 + $0x740] sm:$0xff] }
  0x74   :  { %1451 = vmatpush1.bf16.msra.mxu0 %v1450_v62  ;;  %v483_v57 = vld [vmem:[#allocation6 + $0x6d0] sm:$0xff]  ;;  %v500_v60 = vld [vmem:[#allocation6 + $0x758] sm:$0xff]  ;;  %v489_v62 = vld [vmem:[#allocation6 + $0x700] sm:$0xff] }
  0x75   :  { %1453 = vmatprep.subr.bf16.mxu0 %v1452_v1  ;;  %v1598_v0 = vpack.c.bf16 %v483_v57, %v475_v56  ;;  %v1600_v1 = vpack.c.bf16 %v500_v60, %v492_v59  ;;  %v491_v2 = vld [vmem:[#allocation6 + $0x710] sm:$0xff]  ;;  %v506_v6 = vld [vmem:[#allocation6 + $0x788] sm:$0xff]  ;;  %v508_v8 = vld [vmem:[#allocation6 + $0x798] sm:$0xff] }
  0x76   :  { %1579 = vmatpush1.bf16.msra.mxu1 %v1578_v4  ;;  %v499_v3 = vld [vmem:[#allocation6 + $0x750] sm:$0xff]  ;;  %v1474_v4 = vpack.c.bf16 %v497_v63, %v489_v62  ;;  %v505_v11 = vld [vmem:[#allocation6 + $0x780] sm:$0xff]  ;;  %v522_v18 = vld [vmem:[#allocation6 + $0x808] sm:$0xff] }
  0x77   :  { %1581 = vmatprep.subr.bf16.mxu1 %v1580_v7  ;;  %v1602_v5 = vpack.c.bf16 %v499_v3, %v491_v2  ;;  %v514_v7 = vld [vmem:[#allocation6 + $0x7c8] sm:$0xff]  ;;  %v513_v12 = vld [vmem:[#allocation6 + $0x7c0] sm:$0xff]  ;;  %v507_v15 = vld [vmem:[#allocation6 + $0x790] sm:$0xff] }
  0x78   :  { %1455 = vmatpush1.bf16.msra.mxu0 %v1454_v10  ;;  %v1476_v9 = vpack.c.bf16 %v514_v7, %v506_v6  ;;  %v516_v10 = vld [vmem:[#allocation6 + $0x7d8] sm:$0xff]  ;;  %v1478_v14 = vpack.c.bf16 %v513_v12, %v505_v11  ;;  %v529_v32 = vld [vmem:[#allocation6 + $0x840] sm:$0xff]  ;;  %v531_v35 = vld [vmem:[#allocation6 + $0x850] sm:$0xff] }
  0x79   :  { %1457 = vmatprep.subr.bf16.mxu0 %v1456_v13  ;;  %v1604_v13 = vpack.c.bf16 %v516_v10, %v508_v8  ;;  %v524_v20 = vld [vmem:[#allocation6 + $0x818] sm:$0xff]  ;;  %v538_v36 = vld [vmem:[#allocation6 + $0x888] sm:$0xff]  ;;  %v545_v47 = vld [vmem:[#allocation6 + $0x8c0] sm:$0xff] }
  0x7a   :  { %1583 = vmatpush1.bf16.msra.mxu1 %v1582_v16  ;;  %v515_v16 = vld [vmem:[#allocation6 + $0x7d0] sm:$0xff]  ;;  %v2153_v27 = vld [vmem:[#allocation4] sm:$0xf]  ;;  %v546_v38 = vld [vmem:[#allocation6 + $0x8c8] sm:$0xff] }
  0x7b   :  { %1585 = vmatprep.subr.bf16.mxu1 %v1584_v19  ;;  %v1606_v17 = vpack.c.bf16 %v515_v16, %v507_v15  ;;  %v530_v19 = vld [vmem:[#allocation6 + $0x848] sm:$0xff]  ;;  %v540_v39 = vld [vmem:[#allocation6 + $0x898] sm:$0xff]  ;;  %v1484_v50 = vpack.c.bf16 %v546_v38, %v538_v36  ;;  %v547_v53 = vld [vmem:[#allocation6 + $0x8d0] sm:$0xff] }
  0x7c   :  { %1459 = vmatpush1.bf16.msra.mxu0 %v1458_v22  ;;  %v1480_v21 = vpack.c.bf16 %v530_v19, %v522_v18  ;;  %v532_v22 = vld [vmem:[#allocation6 + $0x858] sm:$0xff]  ;;  %v554_v54 = vld [vmem:[#allocation6 + $0x908] sm:$0xff]  ;;  %v553_v62 = vld [vmem:[#allocation6 + $0x900] sm:$0xff] }
  0x7d   :  { %1461 = vmatprep.subr.bf16.mxu0 %v1460_v25  ;;  %v1608_v23 = vpack.c.bf16 %v532_v22, %v524_v20  ;;  %v2150_v25 = vshrl.u32 %v86_v24, 7  ;;  %v562_v56 = vld [vmem:[#allocation6 + $0x948] sm:$0xff]  ;;  %v556_v57 = vld [vmem:[#allocation6 + $0x918] sm:$0xff]  ;;  %v561_v63 = vld [vmem:[#allocation6 + $0x940] sm:$0xff] }
  0x7e   :  { %1587 = vmatpush1.bf16.msra.mxu1 %v1586_v28  ;;  %v555_v2 = vld [vmem:[#allocation6 + $0x910] sm:$0xff]  ;;  %v572_v6 = vld [vmem:[#allocation6 + $0x998] sm:$0xff]  ;;  %v1490_v8 = vpack.c.bf16 %v561_v63, %v553_v62  ;;  %v569_v10 = vld [vmem:[#allocation6 + $0x980] sm:$0xff] }
  0x7f   :  { %1589 = vmatprep.subr.bf16.mxu1 %v1588_v31  ;;  %v92_v26 = vsub.s32 1, %v2150_v25  ;;  %v88_v28 = vsub.s32 0, %v2150_v25  ;;  %v100_v29 = vsub.s32 3, %v2150_v25  ;;  %v521_v31 = vld [vmem:[#allocation6 + $0x800] sm:$0xff]  ;;  %v563_v3 = vld [vmem:[#allocation6 + $0x950] sm:$0xff]  ;;  %v580_v7 = vld [vmem:[#allocation6 + $0x9d8] sm:$0xff] }
  0x80   :  { %1463 = vmatpush1.bf16.msra.mxu0 %v1462_v34  ;;  %v523_v34 = vld [vmem:[#allocation6 + $0x810] sm:$0xff]  ;;  %v1482_v44 = vpack.c.bf16 %v529_v32, %v521_v31  ;;  %v577_v11 = vld [vmem:[#allocation6 + $0x9c0] sm:$0xff]  ;;  %v586_v16 = vld [vmem:[#allocation6 + $0xa08] sm:$0xff] }
  0x81   :  { %1465 = vmatprep.subr.bf16.mxu0 %v1464_v37  ;;  %v93_v30 = vrot.slane %v2153_v27, %v92_v26  ;;  %v89_v33 = vrot.slane %v2153_v27, %v88_v28  ;;  %v101_v41 = vrot.slane %v2153_v27, %v100_v29  ;;  %v1610_v45 = vpack.c.bf16 %v531_v35, %v523_v34  ;;  %v579_v15 = vld [vmem:[#allocation6 + $0x9d0] sm:$0xff]  ;;  %v588_v18 = vld [vmem:[#allocation6 + $0xa18] sm:$0xff]  ;;  %v585_v22 = vld [vmem:[#allocation6 + $0xa00] sm:$0xff] }
  0x82   :  { %1591 = vmatpush1.bf16.msra.mxu1 %v1590_v40  ;;  %v548_v40 = vld [vmem:[#allocation6 + $0x8d8] sm:$0xff]  ;;  %v1494_v20 = vpack.c.bf16 %v577_v11, %v569_v10  ;;  %v587_v31 = vld [vmem:[#allocation6 + $0xa10] sm:$0xff]  ;;  %v610_v34 = vld [vmem:[#allocation6 + $0xac8] sm:$0xff] }
  0x83   :  { %1593 = vmatprep.subr.bf16.mxu1 %v1592_v43  ;;  %v1612_v51 = vpack.c.bf16 %v548_v40, %v540_v39  ;;  %v596_v19 = vld [vmem:[#allocation6 + $0xa58] sm:$0xff]  ;;  %v595_v32 = vld [vmem:[#allocation6 + $0xa50] sm:$0xff]  ;;  %v601_v39 = vld [vmem:[#allocation6 + $0xa80] sm:$0xff] }
  0x84   :  { %1467 = vmatpush1.bf16.msra.mxu0 %v1466_v46  ;;  %v537_v46 = vld [vmem:[#allocation6 + $0x880] sm:$0xff]  ;;  %v604_v35 = vld [vmem:[#allocation6 + $0xa98] sm:$0xff]  ;;  %v1626_v38 = vpack.c.bf16 %v595_v32, %v587_v31  ;;  %v642_v62 = vld [vmem:[#allocation6 + $0xbc8] sm:$0xff] }
  0x85   :  { %1469 = vmatprep.subr.bf16.mxu0 %v1468_v49  ;;  %v1486_v60 = vpack.c.bf16 %v545_v47, %v537_v46  ;;  %v612_v36 = vld [vmem:[#allocation6 + $0xad8] sm:$0xff]  ;;  %v609_v40 = vld [vmem:[#allocation6 + $0xac0] sm:$0xff]  ;;  %v618_v46 = vld [vmem:[#allocation6 + $0xb08] sm:$0xff] }
  0x86   :  { %1595 = vmatpush1.bf16.msra.mxu1 %v1594_v52  ;;  %v539_v52 = vld [vmem:[#allocation6 + $0x890] sm:$0xff]  ;;  %v626_v47 = vld [vmem:[#allocation6 + $0xb48] sm:$0xff]  ;;  %v636_v63 = vld [vmem:[#allocation6 + $0xb98] sm:$0xff] }
  0x87   :  { %1597 = vmatprep.subr.bf16.mxu1 %v1596_v55  ;;  %v658_v10 = vld [vmem:[#allocation6 + $0xc48] sm:$0xff]  ;;  %v652_v11 = vld [vmem:[#allocation6 + $0xc18] sm:$0xff]  ;;  %v665_v32 = vld [vmem:[#allocation6 + $0xc80] sm:$0xff] }
  0x88   :  { %1471 = vmatpush1.bf16.msra.mxu0 %v1470_v58  ;;  %v564_v58 = vld [vmem:[#allocation6 + $0x958] sm:$0xff] }
  0x89   :  { %1473 = vmatprep.subr.bf16.mxu0 %v1472_v61  ;;  %v1614_v61 = vpack.c.bf16 %v547_v53, %v539_v52  ;;  %v1502_v52 = vpack.c.bf16 %v609_v40, %v601_v39  ;;  %v690_v39 = vld [vmem:[#allocation6 + $0xd48] sm:$0xff]  ;;  %v684_v40 = vld [vmem:[#allocation6 + $0xd18] sm:$0xff] }
  0x8a   :  { %1599 = vmatpush1.bf16.msra.mxu1 %v1598_v0  ;;  %v1488_v0 = vpack.c.bf16 %v562_v56, %v554_v54  ;;  %v617_v54 = vld [vmem:[#allocation6 + $0xb00] sm:$0xff]  ;;  %v1504_v56 = vpack.c.bf16 %v626_v47, %v618_v46 }
  0x8b   :  { %1601 = vmatprep.subr.bf16.mxu1 %v1600_v1  ;;  %v1616_v1 = vpack.c.bf16 %v564_v58, %v556_v57  ;;  %v619_v58 = vld [vmem:[#allocation6 + $0xb10] sm:$0xff]  ;;  %v689_v46 = vld [vmem:[#allocation6 + $0xd40] sm:$0xff] }
  0x8c   :  { %1475 = vmatpush1.bf16.msra.mxu0 %v1474_v4  ;;  %v570_v4 = vld [vmem:[#allocation6 + $0x988] sm:$0xff] }
  0x8d   :  { %1477 = vmatprep.subr.bf16.mxu0 %v1476_v9  ;;  %v1618_v9 = vpack.c.bf16 %v563_v3, %v555_v2  ;;  %v633_v3 = vld [vmem:[#allocation6 + $0xb80] sm:$0xff] }
  0x8e   :  { %1603 = vmatpush1.bf16.msra.mxu1 %v1602_v5  ;;  %v578_v5 = vld [vmem:[#allocation6 + $0x9c8] sm:$0xff] }
  0x8f   :  { %1605 = vmatprep.subr.bf16.mxu1 %v1604_v13  ;;  %v1492_v12 = vpack.c.bf16 %v578_v5, %v570_v4  ;;  %v1620_v13 = vpack.c.bf16 %v580_v7, %v572_v6  ;;  %v641_v4 = vld [vmem:[#allocation6 + $0xbc0] sm:$0xff]  ;;  %v635_v7 = vld [vmem:[#allocation6 + $0xb90] sm:$0xff] }
  0x90   :  { %1479 = vmatpush1.bf16.msra.mxu0 %v1478_v14  ;;  %v571_v14 = vld [vmem:[#allocation6 + $0x990] sm:$0xff] }
  0x91   :  { %1481 = vmatprep.subr.bf16.mxu0 %v1480_v21  ;;  %v1622_v21 = vpack.c.bf16 %v579_v15, %v571_v14  ;;  %v649_v15 = vld [vmem:[#allocation6 + $0xc00] sm:$0xff] }
  0x92   :  { %1607 = vmatpush1.bf16.msra.mxu1 %v1606_v17  ;;  %v594_v17 = vld [vmem:[#allocation6 + $0xa48] sm:$0xff] }
  0x93   :  { %1609 = vmatprep.subr.bf16.mxu1 %v1608_v23  ;;  %v593_v23 = vld [vmem:[#allocation6 + $0xa40] sm:$0xff]  ;;  %v1496_v24 = vpack.c.bf16 %v594_v17, %v586_v16 }
  0x94   :  { %v657_v16 = vld [vmem:[#allocation6 + $0xc40] sm:$0xff] }
 0x126   :  { %v189_v37 = vpop.f32.mrb[0].mxu0 }
 0x127   :  { %v191_v42 = vpop.f32.mrb[1].mxu0  ;;  %v2170_v49 = vadd.f32 %v189_v37, %v89_v33  ;;  %v602_v33 = vld [vmem:[#allocation6 + $0xa88] sm:$0xff]  ;;  %v1498_v37 = vpack.c.bf16 %v593_v23, %v585_v22  ;;  %v668_v23 = vld [vmem:[#allocation6 + $0xc98] sm:$0xff] }
 0x128   :  { %v2166_v43 = vadd.f32 %v191_v42, %v93_v30  ;;  %v2168_v48 = vpop.f32.mrb[0].mxu1  ;;  %v1624_v30 = vpack.c.bf16 %v596_v19, %v588_v18  ;;  %v1628_v42 = vpack.c.bf16 %v612_v36, %v604_v35  ;;  %v651_v19 = vld [vmem:[#allocation6 + $0xc10] sm:$0xff]  ;;  %v674_v22 = vld [vmem:[#allocation6 + $0xcc8] sm:$0xff] }
 0x129   :  { %v262_v55 = vpop.f32.mrb[1].mxu1  ;;  %v667_v36 = vld [vmem:[#allocation6 + $0xc90] sm:$0xff] }
 0x12a   :  { %883 = vmatprep.mubr.f32.mxu0 %v2166_v43  ;;  %1025 = vmatprep.mubr.f32.mxu1 %v2166_v43  ;;  %v2174_v59 = vadd.f32 %v262_v55, %v101_v41  ;;  %v1500_v41 = vpack.c.bf16 %v610_v34, %v602_v33  ;;  %v625_v55 = vld [vmem:[#allocation6 + $0xb40] sm:$0xff] }
 0x12b   :  { %884 = vmatmul.mubr.f32.vlgmr.msra.gmra.mrb[2].mxu0 %v2170_v49  ;;  %1026 = vmatmul.mubr.f32.vlgmr.msra.gmra.mrb[2].mxu1 %v2170_v49  ;;  %v673_v33 = vld [vmem:[#allocation6 + $0xcc0] sm:$0xff] }
 0x12c   :  { %1483 = vmatpush1.bf16.msra.mxu0 %v1482_v44  ;;  %1611 = vmatpush1.bf16.msra.mxu1 %v1610_v45  ;;  %v603_v44 = vld [vmem:[#allocation6 + $0xa90] sm:$0xff] }
 0x12d   :  { %1485 = vmatprep.subr.bf16.mxu0 %v1484_v50  ;;  %1613 = vmatprep.subr.bf16.mxu1 %v1612_v51  ;;  %v611_v45 = vld [vmem:[#allocation6 + $0xad0] sm:$0xff]  ;;  %v620_v50 = vld [vmem:[#allocation6 + $0xb18] sm:$0xff] }
 0x12e   :  { %954 = vmatprep.mubr.f32.mxu0 %v2174_v59  ;;  %1096 = vmatprep.mubr.f32.mxu1 %v2174_v59  ;;  %v628_v51 = vld [vmem:[#allocation6 + $0xb58] sm:$0xff]  ;;  %v1630_v53 = vpack.c.bf16 %v611_v45, %v603_v44  ;;  %v681_v45 = vld [vmem:[#allocation6 + $0xd00] sm:$0xff] }
 0x12f   :  { %v1632_v57 = vpack.c.bf16 %v628_v51, %v620_v50  ;;  %v683_v51 = vld [vmem:[#allocation6 + $0xd10] sm:$0xff] }
 0x130   :  { %1487 = vmatpush1.bf16.msra.mxu0 %v1486_v60  ;;  %1615 = vmatpush1.bf16.msra.mxu1 %v1614_v61  ;;  %v627_v60 = vld [vmem:[#allocation6 + $0xb50] sm:$0xff]  ;;  %v634_v61 = vld [vmem:[#allocation6 + $0xb88] sm:$0xff] }
 0x131   :  { %1489 = vmatprep.subr.bf16.mxu0 %v1488_v0  ;;  %1617 = vmatprep.subr.bf16.mxu1 %v1616_v1  ;;  %v644_v0 = vld [vmem:[#allocation6 + $0xbd8] sm:$0xff]  ;;  %v1506_v1 = vpack.c.bf16 %v625_v55, %v617_v54  ;;  %v1634_v2 = vpack.c.bf16 %v627_v60, %v619_v58  ;;  %v1508_v5 = vpack.c.bf16 %v642_v62, %v634_v61  ;;  %v706_v54 = vld [vmem:[#allocation6 + $0xdc8] sm:$0xff]  ;;  %v697_v60 = vld [vmem:[#allocation6 + $0xd80] sm:$0xff] }
 0x132   :  { %v1636_v6 = vpack.c.bf16 %v644_v0, %v636_v63  ;;  %v700_v55 = vld [vmem:[#allocation6 + $0xd98] sm:$0xff]  ;;  %v705_v61 = vld [vmem:[#allocation6 + $0xdc0] sm:$0xff]  ;;  %v699_v0 = vld [vmem:[#allocation6 + $0xd90] sm:$0xff] }
 0x134   :  { %1491 = vmatpush1.bf16.msra.mxu0 %v1490_v8  ;;  %1619 = vmatpush1.bf16.msra.mxu1 %v1618_v9  ;;  %v643_v8 = vld [vmem:[#allocation6 + $0xbd0] sm:$0xff]  ;;  %v650_v9 = vld [vmem:[#allocation6 + $0xc08] sm:$0xff] }
 0x135   :  { %1493 = vmatprep.subr.bf16.mxu0 %v1492_v12  ;;  %1621 = vmatprep.subr.bf16.mxu1 %v1620_v13  ;;  %v660_v12 = vld [vmem:[#allocation6 + $0xc58] sm:$0xff]  ;;  %v1510_v13 = vpack.c.bf16 %v641_v4, %v633_v3  ;;  %v1638_v14 = vpack.c.bf16 %v643_v8, %v635_v7  ;;  %v1512_v17 = vpack.c.bf16 %v658_v10, %v650_v9  ;;  %v722_v3 = vld [vmem:[#allocation6 + $0xe48] sm:$0xff]  ;;  %v713_v8 = vld [vmem:[#allocation6 + $0xe00] sm:$0xff] }
 0x136   :  { %v1640_v18 = vpack.c.bf16 %v660_v12, %v652_v11  ;;  %v716_v4 = vld [vmem:[#allocation6 + $0xe18] sm:$0xff]  ;;  %v721_v9 = vld [vmem:[#allocation6 + $0xe40] sm:$0xff]  ;;  %v715_v12 = vld [vmem:[#allocation6 + $0xe10] sm:$0xff] }
 0x138   :  { %1495 = vmatpush1.bf16.msra.mxu0 %v1494_v20  ;;  %1623 = vmatpush1.bf16.msra.mxu1 %v1622_v21  ;;  %v659_v20 = vld [vmem:[#allocation6 + $0xc50] sm:$0xff]  ;;  %v666_v21 = vld [vmem:[#allocation6 + $0xc88] sm:$0xff] }
 0x139   :  { %1497 = vmatprep.subr.bf16.mxu0 %v1496_v24  ;;  %1625 = vmatprep.subr.bf16.mxu1 %v1624_v30  ;;  %v676_v24 = vld [vmem:[#allocation6 + $0xcd8] sm:$0xff]  ;;  %v1514_v30 = vpack.c.bf16 %v657_v16, %v649_v15  ;;  %v1642_v31 = vpack.c.bf16 %v659_v20, %v651_v19  ;;  %v1516_v34 = vpack.c.bf16 %v674_v22, %v666_v21  ;;  %v738_v15 = vld [vmem:[#allocation6 + $0xec8] sm:$0xff]  ;;  %v729_v20 = vld [vmem:[#allocation6 + $0xe80] sm:$0xff] }
 0x13a   :  { %v1644_v35 = vpack.c.bf16 %v676_v24, %v668_v23  ;;  %v732_v16 = vld [vmem:[#allocation6 + $0xe98] sm:$0xff]  ;;  %v737_v21 = vld [vmem:[#allocation6 + $0xec0] sm:$0xff]  ;;  %v731_v24 = vld [vmem:[#allocation6 + $0xe90] sm:$0xff] }
 0x13c   :  { %1499 = vmatpush1.bf16.msra.mxu0 %v1498_v37  ;;  %1627 = vmatpush1.bf16.msra.mxu1 %v1626_v38  ;;  %v675_v37 = vld [vmem:[#allocation6 + $0xcd0] sm:$0xff]  ;;  %v682_v38 = vld [vmem:[#allocation6 + $0xd08] sm:$0xff] }
 0x13d   :  { %1501 = vmatprep.subr.bf16.mxu0 %v1500_v41  ;;  %1629 = vmatprep.subr.bf16.mxu1 %v1628_v42  ;;  %v692_v41 = vld [vmem:[#allocation6 + $0xd58] sm:$0xff]  ;;  %v1518_v42 = vpack.c.bf16 %v673_v33, %v665_v32  ;;  %v1646_v44 = vpack.c.bf16 %v675_v37, %v667_v36  ;;  %v1520_v47 = vpack.c.bf16 %v690_v39, %v682_v38  ;;  %v754_v32 = vld [vmem:[#allocation6 + $0xf48] sm:$0xff]  ;;  %v745_v37 = vld [vmem:[#allocation6 + $0xf00] sm:$0xff] }
 0x13e   :  { %v1648_v50 = vpack.c.bf16 %v692_v41, %v684_v40  ;;  %v748_v33 = vld [vmem:[#allocation6 + $0xf18] sm:$0xff]  ;;  %v753_v38 = vld [vmem:[#allocation6 + $0xf40] sm:$0xff]  ;;  %v747_v41 = vld [vmem:[#allocation6 + $0xf10] sm:$0xff] }
 0x140   :  { %1503 = vmatpush1.bf16.msra.mxu0 %v1502_v52  ;;  %1631 = vmatpush1.bf16.msra.mxu1 %v1630_v53  ;;  %v691_v52 = vld [vmem:[#allocation6 + $0xd50] sm:$0xff]  ;;  %v698_v53 = vld [vmem:[#allocation6 + $0xd88] sm:$0xff] }
 0x141   :  { %1505 = vmatprep.subr.bf16.mxu0 %v1504_v56  ;;  %1633 = vmatprep.subr.bf16.mxu1 %v1632_v57  ;;  %v708_v56 = vld [vmem:[#allocation6 + $0xdd8] sm:$0xff]  ;;  %v1522_v57 = vpack.c.bf16 %v689_v46, %v681_v45  ;;  %v1650_v58 = vpack.c.bf16 %v691_v52, %v683_v51  ;;  %v1524_v62 = vpack.c.bf16 %v706_v54, %v698_v53  ;;  %v770_v45 = vld [vmem:[#allocation6 + $0xfc8] sm:$0xff]  ;;  %v761_v53 = vld [vmem:[#allocation6 + $0xf80] sm:$0xff] }
 0x142   :  { %v1652_v63 = vpack.c.bf16 %v708_v56, %v700_v55  ;;  %v764_v46 = vld [vmem:[#allocation6 + $0xf98] sm:$0xff]  ;;  %v1538_v51 = vpack.c.bf16 %v753_v38, %v745_v37  ;;  %v769_v54 = vld [vmem:[#allocation6 + $0xfc0] sm:$0xff]  ;;  %v318_v37 = vld [vmem:[#allocation6 + $0x1a8] sm:$0xff] }
 0x143   :  { %v326_v38 = vld [vmem:[#allocation6 + $0x1e8] sm:$0xff] }
 0x144   :  { %1507 = vmatpush1.bf16.msra.mxu0 %v1506_v1  ;;  %1635 = vmatpush1.bf16.msra.mxu1 %v1634_v2  ;;  %v707_v1 = vld [vmem:[#allocation6 + $0xdd0] sm:$0xff]  ;;  %v714_v2 = vld [vmem:[#allocation6 + $0xe08] sm:$0xff] }
 0x145   :  { %1509 = vmatprep.subr.bf16.mxu0 %v1508_v5  ;;  %1637 = vmatprep.subr.bf16.mxu1 %v1636_v6  ;;  %v724_v5 = vld [vmem:[#allocation6 + $0xe58] sm:$0xff]  ;;  %v1526_v6 = vpack.c.bf16 %v705_v61, %v697_v60  ;;  %v1654_v7 = vpack.c.bf16 %v707_v1, %v699_v0  ;;  %v1528_v10 = vpack.c.bf16 %v722_v3, %v714_v2  ;;  %v270_v60 = vld [vmem:[#allocation6 + $0x28] sm:$0xff] }
 0x146   :  { %v1656_v11 = vpack.c.bf16 %v724_v5, %v716_v4  ;;  %v278_v61 = vld [vmem:[#allocation6 + $0x68] sm:$0xff]  ;;  %v1542_v1 = vpack.c.bf16 %v769_v54, %v761_v53  ;;  %v269_v5 = vld [vmem:[#allocation6 + $0x20] sm:$0xff]  ;;  %v336_v54 = vld [vmem:[#allocation6 + $0x238] sm:$0xff] }
 0x147   :  { %v1672_v3 = vpack.c.bf16 %v278_v61, %v270_v60  ;;  %v342_v53 = vld [vmem:[#allocation6 + $0x268] sm:$0xff]  ;;  %v333_v60 = vld [vmem:[#allocation6 + $0x220] sm:$0xff] }
 0x148   :  { %1511 = vmatpush1.bf16.msra.mxu0 %v1510_v13  ;;  %1639 = vmatpush1.bf16.msra.mxu1 %v1638_v14  ;;  %v723_v13 = vld [vmem:[#allocation6 + $0xe50] sm:$0xff]  ;;  %v730_v14 = vld [vmem:[#allocation6 + $0xe88] sm:$0xff]  ;;  %v341_v61 = vld [vmem:[#allocation6 + $0x260] sm:$0xff] }
 0x149   :  { %1513 = vmatprep.subr.bf16.mxu0 %v1512_v17  ;;  %1641 = vmatprep.subr.bf16.mxu1 %v1640_v18  ;;  %v740_v17 = vld [vmem:[#allocation6 + $0xed8] sm:$0xff]  ;;  %v1530_v18 = vpack.c.bf16 %v721_v9, %v713_v8  ;;  %v1658_v19 = vpack.c.bf16 %v723_v13, %v715_v12  ;;  %v1532_v22 = vpack.c.bf16 %v738_v15, %v730_v14  ;;  %v279_v8 = vld [vmem:[#allocation6 + $0x70] sm:$0xff]  ;;  %v286_v9 = vld [vmem:[#allocation6 + $0xa8] sm:$0xff] }
 0x14a   :  { %v1660_v23 = vpack.c.bf16 %v740_v17, %v732_v16  ;;  %v288_v12 = vld [vmem:[#allocation6 + $0xb8] sm:$0xff]  ;;  %v285_v15 = vld [vmem:[#allocation6 + $0xa0] sm:$0xff]  ;;  %v287_v17 = vld [vmem:[#allocation6 + $0xb0] sm:$0xff] }
 0x14b   :  { %v296_v13 = vld [vmem:[#allocation6 + $0xf8] sm:$0xff]  ;;  %v293_v16 = vld [vmem:[#allocation6 + $0xe0] sm:$0xff] }
 0x14c   :  { %1515 = vmatpush1.bf16.msra.mxu0 %v1514_v30  ;;  %1643 = vmatpush1.bf16.msra.mxu1 %v1642_v31  ;;  %v739_v30 = vld [vmem:[#allocation6 + $0xed0] sm:$0xff]  ;;  %v746_v31 = vld [vmem:[#allocation6 + $0xf08] sm:$0xff] }
 0x14d   :  { %1517 = vmatprep.subr.bf16.mxu0 %v1516_v34  ;;  %1645 = vmatprep.subr.bf16.mxu1 %v1644_v35  ;;  %v756_v34 = vld [vmem:[#allocation6 + $0xf58] sm:$0xff]  ;;  %v1534_v35 = vpack.c.bf16 %v737_v21, %v729_v20  ;;  %v1662_v36 = vpack.c.bf16 %v739_v30, %v731_v24  ;;  %v1536_v39 = vpack.c.bf16 %v754_v32, %v746_v31  ;;  %v295_v20 = vld [vmem:[#allocation6 + $0xf0] sm:$0xff]  ;;  %v302_v21 = vld [vmem:[#allocation6 + $0x128] sm:$0xff] }
 0x14e   :  { %v1664_v40 = vpack.c.bf16 %v756_v34, %v748_v33  ;;  %v1678_v24 = vpack.c.bf16 %v293_v16, %v285_v15  ;;  %v1806_v30 = vpack.c.bf16 %v295_v20, %v287_v17  ;;  %v301_v32 = vld [vmem:[#allocation6 + $0x120] sm:$0xff]  ;;  %v303_v34 = vld [vmem:[#allocation6 + $0x130] sm:$0xff]  ;;  %v368_v15 = vld [vmem:[#allocation6 + $0x338] sm:$0xff] }
 0x14f   :  { %v309_v33 = vld [vmem:[#allocation6 + $0x160] sm:$0xff]  ;;  %v376_v16 = vld [vmem:[#allocation6 + $0x378] sm:$0xff] }
 0x150   :  { %1519 = vmatpush1.bf16.msra.mxu0 %v1518_v42  ;;  %1647 = vmatpush1.bf16.msra.mxu1 %v1646_v44  ;;  %v755_v42 = vld [vmem:[#allocation6 + $0xf50] sm:$0xff]  ;;  %v762_v44 = vld [vmem:[#allocation6 + $0xf88] sm:$0xff]  ;;  %v365_v20 = vld [vmem:[#allocation6 + $0x320] sm:$0xff] }
 0x151   :  { %1521 = vmatprep.subr.bf16.mxu0 %v1520_v47  ;;  %1649 = vmatprep.subr.bf16.mxu1 %v1648_v50  ;;  %v772_v47 = vld [vmem:[#allocation6 + $0xfd8] sm:$0xff]  ;;  %v96_v50 = vsub.s32 2, %v2150_v25  ;;  %v1666_v52 = vpack.c.bf16 %v755_v42, %v747_v41  ;;  %v1540_v55 = vpack.c.bf16 %v770_v45, %v762_v44  ;;  %v1682_v41 = vpack.c.bf16 %v309_v33, %v301_v32  ;;  %v325_v45 = vld [vmem:[#allocation6 + $0x1e0] sm:$0xff] }
 0x152   :  { %v1668_v56 = vpack.c.bf16 %v772_v47, %v764_v46  ;;  %v1684_v44 = vpack.c.bf16 %v326_v38, %v318_v37  ;;  %v319_v46 = vld [vmem:[#allocation6 + $0x1b0] sm:$0xff]  ;;  %v392_v32 = vld [vmem:[#allocation6 + $0x3f8] sm:$0xff]  ;;  %v389_v37 = vld [vmem:[#allocation6 + $0x3e0] sm:$0xff] }
 0x153   :  { %v97_v0 = vrot.slane %v2153_v27, %v96_v50  ;;  %v383_v38 = vld [vmem:[#allocation6 + $0x3b0] sm:$0xff] }
 0x154   :  { %1523 = vmatpush1.bf16.msra.mxu0 %v1522_v57  ;;  %1651 = vmatpush1.bf16.msra.mxu1 %v1650_v58  ;;  %v763_v57 = vld [vmem:[#allocation6 + $0xf90] sm:$0xff] }
 0x155   :  { %1525 = vmatprep.subr.bf16.mxu0 %v1524_v62  ;;  %1653 = vmatprep.subr.bf16.mxu1 %v1652_v63  ;;  %v771_v58 = vld [vmem:[#allocation6 + $0xfd0] sm:$0xff]  ;;  %v272_v62 = vld [vmem:[#allocation6 + $0x38] sm:$0xff] }
 0x156   :  { %v280_v63 = vld [vmem:[#allocation6 + $0x78] sm:$0xff]  ;;  %v1670_v2 = vpack.c.bf16 %v771_v58, %v763_v57 }
 0x157   :  { %v1800_v4 = vpack.c.bf16 %v280_v63, %v272_v62  ;;  %v335_v62 = vld [vmem:[#allocation6 + $0x230] sm:$0xff] }
 0x158   :  { %1527 = vmatpush1.bf16.msra.mxu0 %v1526_v6  ;;  %1655 = vmatpush1.bf16.msra.mxu1 %v1654_v7  ;;  %v277_v6 = vld [vmem:[#allocation6 + $0x60] sm:$0xff]  ;;  %v271_v7 = vld [vmem:[#allocation6 + $0x30] sm:$0xff] }
 0x159   :  { %1529 = vmatprep.subr.bf16.mxu0 %v1528_v10  ;;  %1657 = vmatprep.subr.bf16.mxu1 %v1656_v11  ;;  %v2185_v10 = vadd.f32 %v2168_v48, %v97_v0  ;;  %v294_v11 = vld [vmem:[#allocation6 + $0xe8] sm:$0xff]  ;;  %v1674_v27 = vpack.c.bf16 %v277_v6, %v269_v5  ;;  %v1802_v14 = vpack.c.bf16 %v279_v8, %v271_v7  ;;  %v304_v48 = vld [vmem:[#allocation6 + $0x138] sm:$0xff]  ;;  %v343_v0 = vld [vmem:[#allocation6 + $0x270] sm:$0xff] }
 0x15a   :  { %v1690_v5 = vpack.c.bf16 %v341_v61, %v333_v60  ;;  %v1818_v6 = vpack.c.bf16 %v343_v0, %v335_v62  ;;  %v349_v8 = vld [vmem:[#allocation6 + $0x2a0] sm:$0xff]  ;;  %v424_v60 = vld [vmem:[#allocation6 + $0x4f8] sm:$0xff] }
 0x15b   :  { %v413_v0 = vld [vmem:[#allocation6 + $0x4a0] sm:$0xff] }
 0x15c   :  { %1531 = vmatpush1.bf16.msra.mxu0 %v1530_v18  ;;  %1659 = vmatpush1.bf16.msra.mxu1 %v1658_v19  ;;  %v1676_v18 = vpack.c.bf16 %v294_v11, %v286_v9  ;;  %v1804_v19 = vpack.c.bf16 %v296_v13, %v288_v12  ;;  %v357_v9 = vld [vmem:[#allocation6 + $0x2e0] sm:$0xff]  ;;  %v351_v11 = vld [vmem:[#allocation6 + $0x2b0] sm:$0xff] }
 0x15d   :  { %1533 = vmatprep.subr.bf16.mxu0 %v1532_v22  ;;  %1661 = vmatprep.subr.bf16.mxu1 %v1660_v23  ;;  %v310_v22 = vld [vmem:[#allocation6 + $0x168] sm:$0xff]  ;;  %v312_v23 = vld [vmem:[#allocation6 + $0x178] sm:$0xff]  ;;  %v359_v13 = vld [vmem:[#allocation6 + $0x2f0] sm:$0xff]  ;;  %v1694_v17 = vpack.c.bf16 %v357_v9, %v349_v8 }
 0x15e   :  { %v1680_v31 = vpack.c.bf16 %v310_v22, %v302_v21  ;;  %v373_v21 = vld [vmem:[#allocation6 + $0x360] sm:$0xff]  ;;  %v367_v22 = vld [vmem:[#allocation6 + $0x330] sm:$0xff]  ;;  %v440_v8 = vld [vmem:[#allocation6 + $0x578] sm:$0xff] }
 0x15f   :  { %v1698_v33 = vpack.c.bf16 %v373_v21, %v365_v20  ;;  %v456_v20 = vld [vmem:[#allocation6 + $0x5f8] sm:$0xff] }
 0x160   :  { %1535 = vmatpush1.bf16.msra.mxu0 %v1534_v35  ;;  %1663 = vmatpush1.bf16.msra.mxu1 %v1662_v36  ;;  %v1808_v35 = vpack.c.bf16 %v312_v23, %v304_v48  ;;  %v311_v36 = vld [vmem:[#allocation6 + $0x170] sm:$0xff]  ;;  %v1824_v48 = vpack.c.bf16 %v376_v16, %v368_v15 }
 0x161   :  { %1537 = vmatprep.subr.bf16.mxu0 %v1536_v39  ;;  %1665 = vmatprep.subr.bf16.mxu1 %v1664_v40  ;;  %v320_v39 = vld [vmem:[#allocation6 + $0x1b8] sm:$0xff]  ;;  %v1810_v42 = vpack.c.bf16 %v311_v36, %v303_v34  ;;  %v375_v23 = vld [vmem:[#allocation6 + $0x370] sm:$0xff]  ;;  %v381_v36 = vld [vmem:[#allocation6 + $0x3a0] sm:$0xff] }
 0x162   :  { %v328_v40 = vld [vmem:[#allocation6 + $0x1f8] sm:$0xff]  ;;  %v1826_v34 = vpack.c.bf16 %v375_v23, %v367_v22  ;;  %v439_v16 = vld [vmem:[#allocation6 + $0x570] sm:$0xff]  ;;  %v445_v23 = vld [vmem:[#allocation6 + $0x5a0] sm:$0xff] }
 0x163   :  { %v1812_v47 = vpack.c.bf16 %v328_v40, %v320_v39  ;;  %v391_v40 = vld [vmem:[#allocation6 + $0x3f0] sm:$0xff] }
 0x164   :  { %1539 = vmatpush1.bf16.msra.mxu0 %v1538_v51  ;;  %1667 = vmatpush1.bf16.msra.mxu1 %v1666_v52  ;;  %v327_v51 = vld [vmem:[#allocation6 + $0x1f0] sm:$0xff]  ;;  %v334_v52 = vld [vmem:[#allocation6 + $0x228] sm:$0xff] }
 0x165   :  { %1541 = vmatprep.subr.bf16.mxu0 %v1540_v55  ;;  %1669 = vmatprep.subr.bf16.mxu1 %v1668_v56  ;;  %v344_v55 = vld [vmem:[#allocation6 + $0x278] sm:$0xff]  ;;  %v1814_v57 = vpack.c.bf16 %v327_v51, %v319_v46  ;;  %v1688_v58 = vpack.c.bf16 %v342_v53, %v334_v52  ;;  %v1830_v46 = vpack.c.bf16 %v391_v40, %v383_v38  ;;  %v397_v51 = vld [vmem:[#allocation6 + $0x420] sm:$0xff]  ;;  %v399_v53 = vld [vmem:[#allocation6 + $0x430] sm:$0xff] }
 0x166   :  { %v1816_v63 = vpack.c.bf16 %v344_v55, %v336_v54  ;;  %v405_v52 = vld [vmem:[#allocation6 + $0x460] sm:$0xff]  ;;  %v407_v55 = vld [vmem:[#allocation6 + $0x470] sm:$0xff] }
 0x167   :  { %v1706_v61 = vpack.c.bf16 %v405_v52, %v397_v51  ;;  %v1834_v62 = vpack.c.bf16 %v407_v55, %v399_v53  ;;  %v461_v40 = vld [vmem:[#allocation6 + $0x620] sm:$0xff]  ;;  %v488_v51 = vld [vmem:[#allocation6 + $0x6f8] sm:$0xff] }
 0x168   :  { %1543 = vmatpush1.bf16.msra.mxu0 %v1542_v1  ;;  %1671 = vmatpush1.bf16.msra.mxu1 %v1670_v2  ;;  %v350_v1 = vld [vmem:[#allocation6 + $0x2a8] sm:$0xff]  ;;  %v477_v55 = vld [vmem:[#allocation6 + $0x6a0] sm:$0xff] }
 0x169   :  { %1673 = vmatprep.subr.bf16.mxu0 %v1672_v3  ;;  %1801 = vmatprep.subr.bf16.mxu1 %v1800_v4  ;;  %v358_v2 = vld [vmem:[#allocation6 + $0x2e8] sm:$0xff]  ;;  %v352_v3 = vld [vmem:[#allocation6 + $0x2b8] sm:$0xff] }
 0x16a   :  { %v360_v4 = vld [vmem:[#allocation6 + $0x2f8] sm:$0xff]  ;;  %v1692_v7 = vpack.c.bf16 %v358_v2, %v350_v1  ;;  %v421_v1 = vld [vmem:[#allocation6 + $0x4e0] sm:$0xff]  ;;  %v415_v2 = vld [vmem:[#allocation6 + $0x4b0] sm:$0xff] }
 0x16b   :  { %955 = vmatmul.mubr.f32.vlgmr.msra.gmra.mrb[2].mxu0 %v2185_v10  ;;  %1097 = vmatmul.mubr.f32.vlgmr.msra.gmra.mrb[2].mxu1 %v2185_v10  ;;  %v1820_v12 = vpack.c.bf16 %v360_v4, %v352_v3  ;;  %v423_v4 = vld [vmem:[#allocation6 + $0x4f0] sm:$0xff]  ;;  %v1710_v9 = vpack.c.bf16 %v421_v1, %v413_v0  ;;  %v504_v0 = vld [vmem:[#allocation6 + $0x778] sm:$0xff] }
 0x16c   :  { %1675 = vmatpush1.bf16.msra.mxu0 %v1674_v27  ;;  %1167 = vmatprep.mubr.f32.mxu0 %v2166_v43  ;;  %v366_v27 = vld [vmem:[#allocation6 + $0x328] sm:$0xff] }
 0x16d   :  { %1803 = vmatpush1.bf16.msra.mxu1 %v1802_v14  ;;  %1309 = vmatprep.mubr.f32.mxu1 %v2166_v43  ;;  %v317_v43 = vld [vmem:[#allocation6 + $0x1a0] sm:$0xff]  ;;  %v374_v14 = vld [vmem:[#allocation6 + $0x368] sm:$0xff] }
 0x16e   :  { %1677 = vmatprep.subr.bf16.mxu0 %v1676_v18  ;;  %1805 = vmatprep.subr.bf16.mxu1 %v1804_v19  ;;  %v1686_v56 = vpack.c.bf16 %v325_v45, %v317_v43  ;;  %v1822_v18 = vpack.c.bf16 %v359_v13, %v351_v11  ;;  %v1696_v19 = vpack.c.bf16 %v374_v14, %v366_v27  ;;  %v408_v43 = vld [vmem:[#allocation6 + $0x478] sm:$0xff]  ;;  %v429_v13 = vld [vmem:[#allocation6 + $0x520] sm:$0xff]  ;;  %v431_v14 = vld [vmem:[#allocation6 + $0x530] sm:$0xff] }
 0x16f   :  { %v1702_v45 = vpack.c.bf16 %v389_v37, %v381_v36  ;;  %v1838_v11 = vpack.c.bf16 %v423_v4, %v415_v2  ;;  %v437_v27 = vld [vmem:[#allocation6 + $0x560] sm:$0xff]  ;;  %v1842_v22 = vpack.c.bf16 %v439_v16, %v431_v14  ;;  %v472_v36 = vld [vmem:[#allocation6 + $0x678] sm:$0xff] }
 0x170   :  { %1679 = vmatpush1.bf16.msra.mxu0 %v1678_v24  ;;  %v382_v24 = vld [vmem:[#allocation6 + $0x3a8] sm:$0xff]  ;;  %v1714_v21 = vpack.c.bf16 %v437_v27, %v429_v13  ;;  %v493_v4 = vld [vmem:[#allocation6 + $0x720] sm:$0xff]  ;;  %v520_v13 = vld [vmem:[#allocation6 + $0x7f8] sm:$0xff] }
 0x171   :  { %1807 = vmatpush1.bf16.msra.mxu1 %v1806_v30  ;;  %1681 = vmatprep.subr.bf16.mxu0 %v1680_v31  ;;  %v390_v30 = vld [vmem:[#allocation6 + $0x3e8] sm:$0xff]  ;;  %v384_v31 = vld [vmem:[#allocation6 + $0x3b8] sm:$0xff]  ;;  %v509_v16 = vld [vmem:[#allocation6 + $0x7a0] sm:$0xff] }
 0x172   :  { %1809 = vmatprep.subr.bf16.mxu1 %v1808_v35  ;;  %v1700_v35 = vpack.c.bf16 %v390_v30, %v382_v24  ;;  %v1828_v39 = vpack.c.bf16 %v392_v32, %v384_v31  ;;  %v453_v24 = vld [vmem:[#allocation6 + $0x5e0] sm:$0xff]  ;;  %v447_v30 = vld [vmem:[#allocation6 + $0x5b0] sm:$0xff] }
 0x173   :  { %v455_v32 = vld [vmem:[#allocation6 + $0x5f0] sm:$0xff]  ;;  %v1718_v37 = vpack.c.bf16 %v453_v24, %v445_v23  ;;  %v536_v23 = vld [vmem:[#allocation6 + $0x878] sm:$0xff] }
 0x174   :  { %1683 = vmatpush1.bf16.msra.mxu0 %v1682_v41  ;;  %v398_v41 = vld [vmem:[#allocation6 + $0x428] sm:$0xff]  ;;  %v1846_v38 = vpack.c.bf16 %v455_v32, %v447_v30  ;;  %v525_v32 = vld [vmem:[#allocation6 + $0x820] sm:$0xff] }
 0x175   :  { %1811 = vmatpush1.bf16.msra.mxu1 %v1810_v42  ;;  %1685 = vmatprep.subr.bf16.mxu0 %v1684_v44  ;;  %v406_v42 = vld [vmem:[#allocation6 + $0x468] sm:$0xff]  ;;  %v400_v44 = vld [vmem:[#allocation6 + $0x438] sm:$0xff] }
 0x176   :  { %1813 = vmatprep.subr.bf16.mxu1 %v1812_v47  ;;  %v1704_v47 = vpack.c.bf16 %v406_v42, %v398_v41  ;;  %v1832_v54 = vpack.c.bf16 %v408_v43, %v400_v44  ;;  %v469_v41 = vld [vmem:[#allocation6 + $0x660] sm:$0xff]  ;;  %v463_v42 = vld [vmem:[#allocation6 + $0x630] sm:$0xff] }
 0x177   :  { %v471_v43 = vld [vmem:[#allocation6 + $0x670] sm:$0xff]  ;;  %v1722_v52 = vpack.c.bf16 %v469_v41, %v461_v40  ;;  %v544_v40 = vld [vmem:[#allocation6 + $0x8b8] sm:$0xff] }
 0x178   :  { %1687 = vmatpush1.bf16.msra.mxu0 %v1686_v56  ;;  %v414_v56 = vld [vmem:[#allocation6 + $0x4a8] sm:$0xff]  ;;  %v1850_v53 = vpack.c.bf16 %v471_v43, %v463_v42  ;;  %v552_v41 = vld [vmem:[#allocation6 + $0x8f8] sm:$0xff]  ;;  %v549_v43 = vld [vmem:[#allocation6 + $0x8e0] sm:$0xff] }
 0x179   :  { %1815 = vmatpush1.bf16.msra.mxu1 %v1814_v57  ;;  %1689 = vmatprep.subr.bf16.mxu0 %v1688_v58  ;;  %v422_v57 = vld [vmem:[#allocation6 + $0x4e8] sm:$0xff]  ;;  %v416_v58 = vld [vmem:[#allocation6 + $0x4b8] sm:$0xff] }
 0x17a   :  { %1817 = vmatprep.subr.bf16.mxu1 %v1816_v63  ;;  %v1708_v63 = vpack.c.bf16 %v422_v57, %v414_v56  ;;  %v1836_v3 = vpack.c.bf16 %v424_v60, %v416_v58  ;;  %v485_v56 = vld [vmem:[#allocation6 + $0x6e0] sm:$0xff]  ;;  %v479_v57 = vld [vmem:[#allocation6 + $0x6b0] sm:$0xff] }
 0x17b   :  { %v487_v60 = vld [vmem:[#allocation6 + $0x6f0] sm:$0xff]  ;;  %v1726_v1 = vpack.c.bf16 %v485_v56, %v477_v55  ;;  %v568_v55 = vld [vmem:[#allocation6 + $0x978] sm:$0xff] }
 0x17c   :  { %1691 = vmatpush1.bf16.msra.mxu0 %v1690_v5  ;;  %v430_v5 = vld [vmem:[#allocation6 + $0x528] sm:$0xff]  ;;  %v1854_v2 = vpack.c.bf16 %v487_v60, %v479_v57  ;;  %v557_v60 = vld [vmem:[#allocation6 + $0x920] sm:$0xff] }
 0x17d   :  { %1819 = vmatpush1.bf16.msra.mxu1 %v1818_v6  ;;  %1693 = vmatprep.subr.bf16.mxu0 %v1692_v7  ;;  %v438_v6 = vld [vmem:[#allocation6 + $0x568] sm:$0xff]  ;;  %v432_v7 = vld [vmem:[#allocation6 + $0x538] sm:$0xff] }
 0x17e   :  { %1821 = vmatprep.subr.bf16.mxu1 %v1820_v12  ;;  %v1712_v12 = vpack.c.bf16 %v438_v6, %v430_v5  ;;  %v1840_v15 = vpack.c.bf16 %v440_v8, %v432_v7  ;;  %v501_v5 = vld [vmem:[#allocation6 + $0x760] sm:$0xff]  ;;  %v495_v6 = vld [vmem:[#allocation6 + $0x730] sm:$0xff] }
 0x17f   :  { %v503_v8 = vld [vmem:[#allocation6 + $0x770] sm:$0xff]  ;;  %v1730_v27 = vpack.c.bf16 %v501_v5, %v493_v4 }
 0x180   :  { %1695 = vmatpush1.bf16.msra.mxu0 %v1694_v17  ;;  %v446_v17 = vld [vmem:[#allocation6 + $0x5a8] sm:$0xff]  ;;  %v1858_v14 = vpack.c.bf16 %v503_v8, %v495_v6  ;;  %v581_v8 = vld [vmem:[#allocation6 + $0x9e0] sm:$0xff] }
 0x181   :  { %1823 = vmatpush1.bf16.msra.mxu1 %v1822_v18  ;;  %1697 = vmatprep.subr.bf16.mxu0 %v1696_v19  ;;  %v454_v18 = vld [vmem:[#allocation6 + $0x5e8] sm:$0xff]  ;;  %v448_v19 = vld [vmem:[#allocation6 + $0x5b8] sm:$0xff] }
 0x182   :  { %1825 = vmatprep.subr.bf16.mxu1 %v1824_v48  ;;  %v1716_v48 = vpack.c.bf16 %v454_v18, %v446_v17  ;;  %v1844_v31 = vpack.c.bf16 %v456_v20, %v448_v19  ;;  %v517_v17 = vld [vmem:[#allocation6 + $0x7e0] sm:$0xff]  ;;  %v511_v18 = vld [vmem:[#allocation6 + $0x7b0] sm:$0xff] }
 0x183   :  { %v519_v20 = vld [vmem:[#allocation6 + $0x7f0] sm:$0xff]  ;;  %v1734_v24 = vpack.c.bf16 %v517_v17, %v509_v16 }
 0x184   :  { %1699 = vmatpush1.bf16.msra.mxu0 %v1698_v33  ;;  %v462_v33 = vld [vmem:[#allocation6 + $0x628] sm:$0xff]  ;;  %v1862_v30 = vpack.c.bf16 %v519_v20, %v511_v18  ;;  %v589_v18 = vld [vmem:[#allocation6 + $0xa20] sm:$0xff]  ;;  %v591_v20 = vld [vmem:[#allocation6 + $0xa30] sm:$0xff] }
 0x185   :  { %1827 = vmatpush1.bf16.msra.mxu1 %v1826_v34  ;;  %1701 = vmatprep.subr.bf16.mxu0 %v1700_v35  ;;  %v470_v34 = vld [vmem:[#allocation6 + $0x668] sm:$0xff]  ;;  %v464_v35 = vld [vmem:[#allocation6 + $0x638] sm:$0xff] }
 0x186   :  { %1829 = vmatprep.subr.bf16.mxu1 %v1828_v39  ;;  %v1720_v39 = vpack.c.bf16 %v470_v34, %v462_v33  ;;  %v1848_v44 = vpack.c.bf16 %v472_v36, %v464_v35  ;;  %v533_v33 = vld [vmem:[#allocation6 + $0x860] sm:$0xff]  ;;  %v527_v35 = vld [vmem:[#allocation6 + $0x830] sm:$0xff] }
 0x187   :  { %v535_v36 = vld [vmem:[#allocation6 + $0x870] sm:$0xff] }
 0x188   :  { %1703 = vmatpush1.bf16.msra.mxu0 %v1702_v45  ;;  %v478_v45 = vld [vmem:[#allocation6 + $0x6a8] sm:$0xff]  ;;  %v1866_v42 = vpack.c.bf16 %v535_v36, %v527_v35  ;;  %v613_v35 = vld [vmem:[#allocation6 + $0xae0] sm:$0xff]  ;;  %v607_v36 = vld [vmem:[#allocation6 + $0xab0] sm:$0xff] }
 0x189   :  { %1831 = vmatpush1.bf16.msra.mxu1 %v1830_v46  ;;  %1705 = vmatprep.subr.bf16.mxu0 %v1704_v47  ;;  %v486_v46 = vld [vmem:[#allocation6 + $0x6e8] sm:$0xff]  ;;  %v480_v47 = vld [vmem:[#allocation6 + $0x6b8] sm:$0xff] }
 0x18a   :  { %1833 = vmatprep.subr.bf16.mxu1 %v1832_v54  ;;  %v1724_v54 = vpack.c.bf16 %v486_v46, %v478_v45  ;;  %v1852_v58 = vpack.c.bf16 %v488_v51, %v480_v47  ;;  %v543_v45 = vld [vmem:[#allocation6 + $0x8b0] sm:$0xff]  ;;  %v558_v51 = vld [vmem:[#allocation6 + $0x928] sm:$0xff] }
 0x18b   :  { %v551_v47 = vld [vmem:[#allocation6 + $0x8f0] sm:$0xff] }
 0x18c   :  { %1707 = vmatpush1.bf16.msra.mxu0 %v1706_v61  ;;  %v494_v61 = vld [vmem:[#allocation6 + $0x728] sm:$0xff]  ;;  %v1870_v57 = vpack.c.bf16 %v551_v47, %v543_v45  ;;  %v629_v47 = vld [vmem:[#allocation6 + $0xb60] sm:$0xff] }
 0x18d   :  { %1835 = vmatpush1.bf16.msra.mxu1 %v1834_v62  ;;  %1709 = vmatprep.subr.bf16.mxu0 %v1708_v63  ;;  %v502_v62 = vld [vmem:[#allocation6 + $0x768] sm:$0xff]  ;;  %v496_v63 = vld [vmem:[#allocation6 + $0x738] sm:$0xff] }
 0x18e   :  { %1837 = vmatprep.subr.bf16.mxu1 %v1836_v3  ;;  %v1728_v3 = vpack.c.bf16 %v502_v62, %v494_v61  ;;  %v1856_v7 = vpack.c.bf16 %v504_v0, %v496_v63  ;;  %v565_v61 = vld [vmem:[#allocation6 + $0x960] sm:$0xff]  ;;  %v559_v62 = vld [vmem:[#allocation6 + $0x930] sm:$0xff] }
 0x18f   :  { %v567_v0 = vld [vmem:[#allocation6 + $0x970] sm:$0xff]  ;;  %v1746_v4 = vpack.c.bf16 %v565_v61, %v557_v60 }
 0x190   :  { %1711 = vmatpush1.bf16.msra.mxu0 %v1710_v9  ;;  %v510_v9 = vld [vmem:[#allocation6 + $0x7a8] sm:$0xff]  ;;  %v1874_v5 = vpack.c.bf16 %v567_v0, %v559_v62  ;;  %v637_v62 = vld [vmem:[#allocation6 + $0xba0] sm:$0xff]  ;;  %v639_v0 = vld [vmem:[#allocation6 + $0xbb0] sm:$0xff] }
 0x191   :  { %1839 = vmatpush1.bf16.msra.mxu1 %v1838_v11  ;;  %1713 = vmatprep.subr.bf16.mxu0 %v1712_v12  ;;  %v518_v11 = vld [vmem:[#allocation6 + $0x7e8] sm:$0xff]  ;;  %v512_v12 = vld [vmem:[#allocation6 + $0x7b8] sm:$0xff] }
 0x192   :  { %1841 = vmatprep.subr.bf16.mxu1 %v1840_v15  ;;  %v1732_v15 = vpack.c.bf16 %v518_v11, %v510_v9  ;;  %v1860_v19 = vpack.c.bf16 %v520_v13, %v512_v12  ;;  %v575_v9 = vld [vmem:[#allocation6 + $0x9b0] sm:$0xff]  ;;  %v590_v12 = vld [vmem:[#allocation6 + $0xa28] sm:$0xff] }
 0x193   :  { %v598_v13 = vld [vmem:[#allocation6 + $0xa68] sm:$0xff] }
 0x194   :  { %1715 = vmatpush1.bf16.msra.mxu0 %v1714_v21  ;;  %v526_v21 = vld [vmem:[#allocation6 + $0x828] sm:$0xff]  ;;  %v1752_v17 = vpack.c.bf16 %v598_v13, %v590_v12  ;;  %v663_v13 = vld [vmem:[#allocation6 + $0xc70] sm:$0xff] }
 0x195   :  { %1843 = vmatpush1.bf16.msra.mxu1 %v1842_v22  ;;  %1717 = vmatprep.subr.bf16.mxu0 %v1716_v48  ;;  %v534_v22 = vld [vmem:[#allocation6 + $0x868] sm:$0xff]  ;;  %v528_v48 = vld [vmem:[#allocation6 + $0x838] sm:$0xff] }
 0x196   :  { %1845 = vmatprep.subr.bf16.mxu1 %v1844_v31  ;;  %v1736_v31 = vpack.c.bf16 %v534_v22, %v526_v21  ;;  %v1864_v34 = vpack.c.bf16 %v536_v23, %v528_v48  ;;  %v599_v22 = vld [vmem:[#allocation6 + $0xa70] sm:$0xff]  ;;  %v606_v48 = vld [vmem:[#allocation6 + $0xaa8] sm:$0xff] }
 0x197   :  { %v614_v23 = vld [vmem:[#allocation6 + $0xae8] sm:$0xff] }
 0x198   :  { %1719 = vmatpush1.bf16.msra.mxu0 %v1718_v37  ;;  %v542_v37 = vld [vmem:[#allocation6 + $0x8a8] sm:$0xff] }
 0x199   :  { %1847 = vmatpush1.bf16.msra.mxu1 %v1846_v38  ;;  %1721 = vmatprep.subr.bf16.mxu0 %v1720_v39  ;;  %v550_v38 = vld [vmem:[#allocation6 + $0x8e8] sm:$0xff]  ;;  %v1738_v39 = vpack.c.bf16 %v533_v33, %v525_v32  ;;  %v1882_v32 = vpack.c.bf16 %v599_v22, %v591_v20  ;;  %v1756_v33 = vpack.c.bf16 %v614_v23, %v606_v48  ;;  %v669_v20 = vld [vmem:[#allocation6 + $0xca0] sm:$0xff]  ;;  %v671_v22 = vld [vmem:[#allocation6 + $0xcb0] sm:$0xff] }
 0x19a   :  { %1849 = vmatprep.subr.bf16.mxu1 %v1848_v44  ;;  %v541_v44 = vld [vmem:[#allocation6 + $0x8a0] sm:$0xff]  ;;  %v1740_v46 = vpack.c.bf16 %v550_v38, %v542_v37  ;;  %v615_v38 = vld [vmem:[#allocation6 + $0xaf0] sm:$0xff] }
 0x19b   :  { %v1742_v56 = vpack.c.bf16 %v549_v43, %v541_v44  ;;  %v1886_v43 = vpack.c.bf16 %v615_v38, %v607_v36  ;;  %v679_v23 = vld [vmem:[#allocation6 + $0xcf0] sm:$0xff]  ;;  %v685_v36 = vld [vmem:[#allocation6 + $0xd20] sm:$0xff] }
 0x19c   :  { %1723 = vmatpush1.bf16.msra.mxu0 %v1722_v52  ;;  %v566_v52 = vld [vmem:[#allocation6 + $0x968] sm:$0xff]  ;;  %v687_v38 = vld [vmem:[#allocation6 + $0xd30] sm:$0xff] }
 0x19d   :  { %1851 = vmatpush1.bf16.msra.mxu1 %v1850_v53  ;;  %1725 = vmatprep.subr.bf16.mxu0 %v1724_v54  ;;  %v1868_v53 = vpack.c.bf16 %v552_v41, %v544_v40  ;;  %v560_v54 = vld [vmem:[#allocation6 + $0x938] sm:$0xff]  ;;  %v630_v40 = vld [vmem:[#allocation6 + $0xb68] sm:$0xff] }
 0x19e   :  { %1853 = vmatprep.subr.bf16.mxu1 %v1852_v58  ;;  %v1744_v58 = vpack.c.bf16 %v566_v52, %v558_v51  ;;  %v1872_v63 = vpack.c.bf16 %v568_v55, %v560_v54  ;;  %v624_v41 = vld [vmem:[#allocation6 + $0xb38] sm:$0xff]  ;;  %v623_v51 = vld [vmem:[#allocation6 + $0xb30] sm:$0xff]  ;;  %v638_v54 = vld [vmem:[#allocation6 + $0xba8] sm:$0xff] }
 0x19f   :  { %v646_v55 = vld [vmem:[#allocation6 + $0xbe8] sm:$0xff] }
 0x1a0   :  { %1727 = vmatpush1.bf16.msra.mxu0 %v1726_v1  ;;  %v574_v1 = vld [vmem:[#allocation6 + $0x9a8] sm:$0xff]  ;;  %v1764_v61 = vpack.c.bf16 %v646_v55, %v638_v54  ;;  %v711_v55 = vld [vmem:[#allocation6 + $0xdf0] sm:$0xff] }
 0x1a1   :  { %1855 = vmatpush1.bf16.msra.mxu1 %v1854_v2  ;;  %1729 = vmatprep.subr.bf16.mxu0 %v1728_v3  ;;  %v582_v2 = vld [vmem:[#allocation6 + $0x9e8] sm:$0xff]  ;;  %v576_v3 = vld [vmem:[#allocation6 + $0x9b8] sm:$0xff] }
 0x1a2   :  { %1857 = vmatprep.subr.bf16.mxu1 %v1856_v7  ;;  %v1748_v6 = vpack.c.bf16 %v582_v2, %v574_v1  ;;  %v573_v7 = vld [vmem:[#allocation6 + $0x9a0] sm:$0xff]  ;;  %v647_v2 = vld [vmem:[#allocation6 + $0xbf0] sm:$0xff] }
 0x1a4   :  { %1731 = vmatpush1.bf16.msra.mxu0 %v1730_v27  ;;  %v592_v27 = vld [vmem:[#allocation6 + $0xa38] sm:$0xff] }
 0x1a5   :  { %1859 = vmatpush1.bf16.msra.mxu1 %v1858_v14  ;;  %1733 = vmatprep.subr.bf16.mxu0 %v1732_v15  ;;  %v600_v14 = vld [vmem:[#allocation6 + $0xa78] sm:$0xff]  ;;  %v1750_v15 = vpack.c.bf16 %v581_v8, %v573_v7  ;;  %v1894_v7 = vpack.c.bf16 %v647_v2, %v639_v0  ;;  %v717_v0 = vld [vmem:[#allocation6 + $0xe20] sm:$0xff]  ;;  %v719_v2 = vld [vmem:[#allocation6 + $0xe30] sm:$0xff] }
 0x1a6   :  { %1861 = vmatprep.subr.bf16.mxu1 %v1860_v19  ;;  %v597_v19 = vld [vmem:[#allocation6 + $0xa60] sm:$0xff]  ;;  %v1880_v21 = vpack.c.bf16 %v600_v14, %v592_v27  ;;  %v670_v27 = vld [vmem:[#allocation6 + $0xca8] sm:$0xff] }
 0x1a7   :  { %v678_v14 = vld [vmem:[#allocation6 + $0xce8] sm:$0xff] }
 0x1a8   :  { %1735 = vmatpush1.bf16.msra.mxu0 %v1734_v24  ;;  %v608_v24 = vld [vmem:[#allocation6 + $0xab8] sm:$0xff] }
 0x1a9   :  { %1863 = vmatpush1.bf16.msra.mxu1 %v1862_v30  ;;  %1737 = vmatprep.subr.bf16.mxu0 %v1736_v31  ;;  %v616_v30 = vld [vmem:[#allocation6 + $0xaf8] sm:$0xff]  ;;  %v1754_v31 = vpack.c.bf16 %v597_v19, %v589_v18  ;;  %v1772_v19 = vpack.c.bf16 %v678_v14, %v670_v27  ;;  %v743_v14 = vld [vmem:[#allocation6 + $0xef0] sm:$0xff] }
 0x1aa   :  { %1865 = vmatprep.subr.bf16.mxu1 %v1864_v34  ;;  %v605_v34 = vld [vmem:[#allocation6 + $0xaa0] sm:$0xff]  ;;  %v1884_v37 = vpack.c.bf16 %v616_v30, %v608_v24  ;;  %v686_v24 = vld [vmem:[#allocation6 + $0xd28] sm:$0xff] }
 0x1ab   :  { %1168 = vmatmul.mubr.f32.vlgmr.msra.gmra.mrb[4].mxu0 %v2170_v49  ;;  %v1758_v44 = vpack.c.bf16 %v613_v35, %v605_v34  ;;  %v694_v30 = vld [vmem:[#allocation6 + $0xd68] sm:$0xff]  ;;  %v1902_v34 = vpack.c.bf16 %v679_v23, %v671_v22  ;;  %v749_v22 = vld [vmem:[#allocation6 + $0xf20] sm:$0xff]  ;;  %v751_v23 = vld [vmem:[#allocation6 + $0xf30] sm:$0xff] }
 0x1ac   :  { %1310 = vmatmul.mubr.f32.vlgmr.msra.gmra.mrb[4].mxu1 %v2170_v49  ;;  %1739 = vmatpush1.bf16.msra.mxu0 %v1738_v39  ;;  %v584_v49 = vld [vmem:[#allocation6 + $0x9f8] sm:$0xff]  ;;  %v622_v39 = vld [vmem:[#allocation6 + $0xb28] sm:$0xff]  ;;  %v1776_v35 = vpack.c.bf16 %v694_v30, %v686_v24  ;;  %v759_v30 = vld [vmem:[#allocation6 + $0xf70] sm:$0xff] }
 0x1ad   :  { %1238 = vmatprep.mubr.f32.mxu0 %v2174_v59  ;;  %1867 = vmatpush1.bf16.msra.mxu1 %v1866_v42  ;;  %v1876_v11 = vpack.c.bf16 %v584_v49, %v576_v3  ;;  %v632_v42 = vld [vmem:[#allocation6 + $0xb78] sm:$0xff]  ;;  %v1760_v45 = vpack.c.bf16 %v630_v40, %v622_v39  ;;  %v654_v3 = vld [vmem:[#allocation6 + $0xc28] sm:$0xff]  ;;  %v695_v40 = vld [vmem:[#allocation6 + $0xd70] sm:$0xff] }
 0x1ae   :  { %1380 = vmatprep.mubr.f32.mxu1 %v2174_v59  ;;  %1741 = vmatprep.subr.bf16.mxu0 %v1740_v46  ;;  %v583_v59 = vld [vmem:[#allocation6 + $0x9f0] sm:$0xff]  ;;  %v621_v46 = vld [vmem:[#allocation6 + $0xb20] sm:$0xff]  ;;  %v1888_v52 = vpack.c.bf16 %v632_v42, %v624_v41  ;;  %v662_v49 = vld [vmem:[#allocation6 + $0xc68] sm:$0xff] }
 0x1af   :  { %1869 = vmatprep.subr.bf16.mxu1 %v1868_v53  ;;  %v1878_v16 = vpack.c.bf16 %v583_v59, %v575_v9  ;;  %v631_v53 = vld [vmem:[#allocation6 + $0xb70] sm:$0xff]  ;;  %v1768_v8 = vpack.c.bf16 %v662_v49, %v654_v3  ;;  %v653_v9 = vld [vmem:[#allocation6 + $0xc20] sm:$0xff]  ;;  %v702_v41 = vld [vmem:[#allocation6 + $0xda8] sm:$0xff] }
 0x1b0   :  { %1743 = vmatpush1.bf16.msra.mxu0 %v1742_v56  ;;  %v640_v56 = vld [vmem:[#allocation6 + $0xbb8] sm:$0xff]  ;;  %v1890_v60 = vpack.c.bf16 %v631_v53, %v623_v51  ;;  %v655_v59 = vld [vmem:[#allocation6 + $0xc30] sm:$0xff]  ;;  %v710_v42 = vld [vmem:[#allocation6 + $0xde8] sm:$0xff] }
 0x1b1   :  { %1871 = vmatpush1.bf16.msra.mxu1 %v1870_v57  ;;  %1745 = vmatprep.subr.bf16.mxu0 %v1744_v58  ;;  %v648_v57 = vld [vmem:[#allocation6 + $0xbf8] sm:$0xff]  ;;  %v1762_v58 = vpack.c.bf16 %v629_v47, %v621_v46  ;;  %v1898_v18 = vpack.c.bf16 %v663_v13, %v655_v59  ;;  %v1906_v46 = vpack.c.bf16 %v695_v40, %v687_v38  ;;  %v701_v51 = vld [vmem:[#allocation6 + $0xda0] sm:$0xff]  ;;  %v703_v53 = vld [vmem:[#allocation6 + $0xdb0] sm:$0xff] }
 0x1b2   :  { %1873 = vmatprep.subr.bf16.mxu1 %v1872_v63  ;;  %v645_v63 = vld [vmem:[#allocation6 + $0xbe0] sm:$0xff]  ;;  %v1892_v1 = vpack.c.bf16 %v648_v57, %v640_v56  ;;  %v1780_v47 = vpack.c.bf16 %v710_v42, %v702_v41  ;;  %v718_v56 = vld [vmem:[#allocation6 + $0xe28] sm:$0xff]  ;;  %v727_v49 = vld [vmem:[#allocation6 + $0xe70] sm:$0xff] }
 0x1b3   :  { %v726_v57 = vld [vmem:[#allocation6 + $0xe68] sm:$0xff]  ;;  %v733_v59 = vld [vmem:[#allocation6 + $0xea0] sm:$0xff]  ;;  %v735_v13 = vld [vmem:[#allocation6 + $0xeb0] sm:$0xff] }
 0x1b4   :  { %1747 = vmatpush1.bf16.msra.mxu0 %v1746_v4  ;;  %v656_v4 = vld [vmem:[#allocation6 + $0xc38] sm:$0xff]  ;;  %v765_v38 = vld [vmem:[#allocation6 + $0xfa0] sm:$0xff]  ;;  %v767_v41 = vld [vmem:[#allocation6 + $0xfb0] sm:$0xff] }
 0x1b5   :  { %1875 = vmatpush1.bf16.msra.mxu1 %v1874_v5  ;;  %1749 = vmatprep.subr.bf16.mxu0 %v1748_v6  ;;  %v664_v5 = vld [vmem:[#allocation6 + $0xc78] sm:$0xff]  ;;  %v1766_v6 = vpack.c.bf16 %v645_v63, %v637_v62  ;;  %v1910_v62 = vpack.c.bf16 %v711_v55, %v703_v53  ;;  %v1784_v63 = vpack.c.bf16 %v726_v57, %v718_v56  ;;  %v775_v42 = vld [vmem:[#allocation6 + $0xff0] sm:$0xff] }
 0x1b6   :  { %1877 = vmatprep.subr.bf16.mxu1 %v1876_v11  ;;  %v661_v11 = vld [vmem:[#allocation6 + $0xc60] sm:$0xff]  ;;  %v1896_v12 = vpack.c.bf16 %v664_v5, %v656_v4  ;;  %v734_v4 = vld [vmem:[#allocation6 + $0xea8] sm:$0xff] }
 0x1b7   :  { %v742_v5 = vld [vmem:[#allocation6 + $0xee8] sm:$0xff] }
 0x1b8   :  { %1751 = vmatpush1.bf16.msra.mxu0 %v1750_v15  ;;  %v672_v15 = vld [vmem:[#allocation6 + $0xcb8] sm:$0xff] }
 0x1b9   :  { %1879 = vmatpush1.bf16.msra.mxu1 %v1878_v16  ;;  %1753 = vmatprep.subr.bf16.mxu0 %v1752_v17  ;;  %v680_v16 = vld [vmem:[#allocation6 + $0xcf8] sm:$0xff]  ;;  %v1770_v17 = vpack.c.bf16 %v661_v11, %v653_v9  ;;  %v1914_v9 = vpack.c.bf16 %v727_v49, %v719_v2  ;;  %v1788_v11 = vpack.c.bf16 %v742_v5, %v734_v4 }
 0x1ba   :  { %1881 = vmatprep.subr.bf16.mxu1 %v1880_v21  ;;  %v677_v21 = vld [vmem:[#allocation6 + $0xce0] sm:$0xff]  ;;  %v1900_v48 = vpack.c.bf16 %v680_v16, %v672_v15  ;;  %v750_v15 = vld [vmem:[#allocation6 + $0xf28] sm:$0xff] }
 0x1bb   :  { %v758_v16 = vld [vmem:[#allocation6 + $0xf68] sm:$0xff] }
 0x1bc   :  { %1755 = vmatpush1.bf16.msra.mxu0 %v1754_v31  ;;  %v688_v31 = vld [vmem:[#allocation6 + $0xd38] sm:$0xff] }
 0x1bd   :  { %1883 = vmatpush1.bf16.msra.mxu1 %v1882_v32  ;;  %1757 = vmatprep.subr.bf16.mxu0 %v1756_v33  ;;  %v696_v32 = vld [vmem:[#allocation6 + $0xd78] sm:$0xff]  ;;  %v1774_v33 = vpack.c.bf16 %v677_v21, %v669_v20  ;;  %v1918_v20 = vpack.c.bf16 %v743_v14, %v735_v13  ;;  %v1792_v21 = vpack.c.bf16 %v758_v16, %v750_v15 }
 0x1be   :  { %1885 = vmatprep.subr.bf16.mxu1 %v1884_v37  ;;  %v693_v37 = vld [vmem:[#allocation6 + $0xd60] sm:$0xff]  ;;  %v1904_v39 = vpack.c.bf16 %v696_v32, %v688_v31  ;;  %v766_v31 = vld [vmem:[#allocation6 + $0xfa8] sm:$0xff] }
 0x1bf   :  { %v774_v32 = vld [vmem:[#allocation6 + $0xfe8] sm:$0xff] }
 0x1c0   :  { %1759 = vmatpush1.bf16.msra.mxu0 %v1758_v44  ;;  %v704_v44 = vld [vmem:[#allocation6 + $0xdb8] sm:$0xff] }
 0x1c1   :  { %1887 = vmatpush1.bf16.msra.mxu1 %v1886_v43  ;;  %1761 = vmatprep.subr.bf16.mxu0 %v1760_v45  ;;  %v712_v43 = vld [vmem:[#allocation6 + $0xdf8] sm:$0xff]  ;;  %v1778_v45 = vpack.c.bf16 %v693_v37, %v685_v36  ;;  %v1922_v36 = vpack.c.bf16 %v759_v30, %v751_v23  ;;  %v1796_v37 = vpack.c.bf16 %v774_v32, %v766_v31 }
 0x1c2   :  { %1889 = vmatprep.subr.bf16.mxu1 %v1888_v52  ;;  %v709_v52 = vld [vmem:[#allocation6 + $0xde0] sm:$0xff]  ;;  %v1908_v54 = vpack.c.bf16 %v712_v43, %v704_v44  ;;  %v1926_v43 = vpack.c.bf16 %v775_v42, %v767_v41 }
 0x1c4   :  { %1763 = vmatpush1.bf16.msra.mxu0 %v1762_v58  ;;  %v720_v58 = vld [vmem:[#allocation6 + $0xe38] sm:$0xff] }
 0x1c5   :  { %1891 = vmatpush1.bf16.msra.mxu1 %v1890_v60  ;;  %1765 = vmatprep.subr.bf16.mxu0 %v1764_v61  ;;  %v728_v60 = vld [vmem:[#allocation6 + $0xe78] sm:$0xff]  ;;  %v1782_v61 = vpack.c.bf16 %v709_v52, %v701_v51 }
 0x1c6   :  { %1893 = vmatprep.subr.bf16.mxu1 %v1892_v1  ;;  %v725_v1 = vld [vmem:[#allocation6 + $0xe60] sm:$0xff]  ;;  %v1912_v3 = vpack.c.bf16 %v728_v60, %v720_v58 }
 0x1c8   :  { %1767 = vmatpush1.bf16.msra.mxu0 %v1766_v6  ;;  %v736_v6 = vld [vmem:[#allocation6 + $0xeb8] sm:$0xff] }
 0x1c9   :  { %1895 = vmatpush1.bf16.msra.mxu1 %v1894_v7  ;;  %1769 = vmatprep.subr.bf16.mxu0 %v1768_v8  ;;  %v744_v7 = vld [vmem:[#allocation6 + $0xef8] sm:$0xff]  ;;  %v1786_v8 = vpack.c.bf16 %v725_v1, %v717_v0 }
 0x1ca   :  { %1897 = vmatprep.subr.bf16.mxu1 %v1896_v12  ;;  %v741_v12 = vld [vmem:[#allocation6 + $0xee0] sm:$0xff]  ;;  %v1916_v27 = vpack.c.bf16 %v744_v7, %v736_v6 }
 0x1cc   :  { %1771 = vmatpush1.bf16.msra.mxu0 %v1770_v17  ;;  %v752_v17 = vld [vmem:[#allocation6 + $0xf38] sm:$0xff] }
 0x1cd   :  { %1899 = vmatpush1.bf16.msra.mxu1 %v1898_v18  ;;  %1773 = vmatprep.subr.bf16.mxu0 %v1772_v19  ;;  %v760_v18 = vld [vmem:[#allocation6 + $0xf78] sm:$0xff]  ;;  %v1790_v19 = vpack.c.bf16 %v741_v12, %v733_v59 }
 0x1ce   :  { %1901 = vmatprep.subr.bf16.mxu1 %v1900_v48  ;;  %v757_v48 = vld [vmem:[#allocation6 + $0xf60] sm:$0xff]  ;;  %v1920_v24 = vpack.c.bf16 %v760_v18, %v752_v17 }
 0x1d0   :  { %1775 = vmatpush1.bf16.msra.mxu0 %v1774_v33  ;;  %v768_v33 = vld [vmem:[#allocation6 + $0xfb8] sm:$0xff] }
 0x1d1   :  { %1903 = vmatpush1.bf16.msra.mxu1 %v1902_v34  ;;  %1777 = vmatprep.subr.bf16.mxu0 %v1776_v35  ;;  %v776_v34 = vld [vmem:[#allocation6 + $0xff8] sm:$0xff]  ;;  %v1794_v35 = vpack.c.bf16 %v757_v48, %v749_v22 }
 0x1d2   :  { %1905 = vmatprep.subr.bf16.mxu1 %v1904_v39  ;;  %v773_v39 = vld [vmem:[#allocation6 + $0xfe0] sm:$0xff]  ;;  %v1924_v40 = vpack.c.bf16 %v776_v34, %v768_v33 }
 0x1d3   :  { %v1798_v44 = vpack.c.bf16 %v773_v39, %v765_v38 }
 0x1d4   :  { %1779 = vmatpush1.bf16.msra.mxu0 %v1778_v45  ;;  %v777_v45 = vld [vmem:[#allocation7] sm:$0xff] }
 0x1d5   :  { %1907 = vmatpush1.bf16.msra.mxu1 %v1906_v46  ;;  %1781 = vmatprep.subr.bf16.mxu0 %v1780_v47  ;;  %v782_v46 = vrot.slane %v777_v45, %v88_v28  ;;  %v790_v47 = vrot.slane %v777_v45, %v96_v50  ;;  %v786_v51 = vrot.slane %v777_v45, %v92_v26  ;;  %v797_v26 = vsub.s32 4, %v2150_v25 }
 0x1d6   :  { %1909 = vmatprep.subr.bf16.mxu1 %v1908_v54  ;;  %v794_v52 = vrot.slane %v777_v45, %v100_v29  ;;  %v805_v28 = vsub.s32 6, %v2150_v25  ;;  %v801_v29 = vsub.s32 5, %v2150_v25  ;;  %v809_v50 = vsub.s32 7, %v2150_v25 }
 0x1d8   :  { %1783 = vmatpush1.bf16.msra.mxu0 %v1782_v61  ;;  %v798_v61 = vrot.slane %v777_v45, %v797_v26  ;;  %v810_v0 = vrot.slane %v777_v45, %v809_v50 }
 0x1d9   :  { %1911 = vmatpush1.bf16.msra.mxu1 %v1910_v62  ;;  %1785 = vmatprep.subr.bf16.mxu0 %v1784_v63  ;;  %v806_v62 = vrot.slane %v777_v45, %v805_v28  ;;  %v802_v63 = vrot.slane %v777_v45, %v801_v29 }
 0x1da   :  { %1913 = vmatprep.subr.bf16.mxu1 %v1912_v3 }
 0x1dc   :  { %1787 = vmatpush1.bf16.msra.mxu0 %v1786_v8 }
 0x1dd   :  { %1915 = vmatpush1.bf16.msra.mxu1 %v1914_v9  ;;  %1789 = vmatprep.subr.bf16.mxu0 %v1788_v11 }
 0x1de   :  { %1917 = vmatprep.subr.bf16.mxu1 %v1916_v27 }
 0x1e0   :  { %1791 = vmatpush1.bf16.msra.mxu0 %v1790_v19 }
 0x1e1   :  { %1919 = vmatpush1.bf16.msra.mxu1 %v1918_v20  ;;  %1793 = vmatprep.subr.bf16.mxu0 %v1792_v21 }
 0x1e2   :  { %1921 = vmatprep.subr.bf16.mxu1 %v1920_v24 }
 0x1e4   :  { %1795 = vmatpush1.bf16.msra.mxu0 %v1794_v35 }
 0x1e5   :  { %1923 = vmatpush1.bf16.msra.mxu1 %v1922_v36  ;;  %1797 = vmatprep.subr.bf16.mxu0 %v1796_v37 }
 0x1e6   :  { %1925 = vmatprep.subr.bf16.mxu1 %v1924_v40 }
 0x1e8   :  { %1799 = vmatpush1.bf16.msra.mxu0 %v1798_v44 }
 0x1e9   :  { %1927 = vmatpush1.bf16.msra.mxu1 %v1926_v43 }
 0x1eb   :  { %1239 = vmatmul.mubr.f32.vlgmr.msra.gmra.mrb[4].mxu0 %v2185_v10 }
 0x1ec   :  { %1381 = vmatmul.mubr.f32.vlgmr.msra.gmra.mrb[4].mxu1 %v2185_v10 }
 0x23e   :  { %v956_v53 = vpop.f32.mrb[2].mxu0  ;;  %v1098_v54 = vpop.f32.mrb[2].mxu1 }
 0x23f   :  { %v1928_v55 = vadd.f32 %v956_v53, %v782_v46  ;;  %v1930_v56 = vadd.f32 %v1098_v54, %v790_v47  ;;  %v958_v57 = vpop.f32.mrb[3].mxu0  ;;  %v1100_v58 = vpop.f32.mrb[3].mxu1 }
 0x240   :  { %v1929_v10 = vadd.f32 %v958_v57, %v786_v51  ;;  %v1931_v60 = vadd.f32 %v1100_v58, %v794_v52 }
 0x241   :  { %1387 = vst [vmem:[%s2238_s5] sm:$0xff] %v1928_v55  ;;  %1389 = vst [vmem:[%s2238_s5 + $0x10] sm:$0xff] %v1930_v56 }
 0x242   :  { %1388 = vst [vmem:[%s2238_s5 + $0x8] sm:$0xff] %v1929_v10  ;;  %1390 = vst [vmem:[%s2238_s5 + $0x18] sm:$0xff] %v1931_v60 }
 0x2be   :  { %v1240_v1 = vpop.f32.mrb[4].mxu0 }
 0x2bf   :  { %v1932_v2 = vadd.f32 %v1240_v1, %v798_v61  ;;  %v1382_v3 = vpop.f32.mrb[4].mxu1  ;;  %v1242_v49 = vpop.f32.mrb[5].mxu0 }
 0x2c0   :  { %v1934_v4 = vadd.f32 %v1382_v3, %v806_v62  ;;  %v1933_v5 = vadd.f32 %v1242_v49, %v802_v63  ;;  %v1384_v6 = vpop.f32.mrb[5].mxu1 }
 0x2c1   :  { %1391 = vst [vmem:[%s2238_s5 + $0x20] sm:$0xff] %v1932_v2  ;;  %v1935_v7 = vadd.f32 %v1384_v6, %v810_v0 }
 0x2c2   :  { %1393 = vst [vmem:[%s2238_s5 + $0x30] sm:$0xff] %v1934_v4  ;;  %1392 = vst [vmem:[%s2238_s5 + $0x28] sm:$0xff] %v1933_v5 }
 0x2c3   :  { %1394 = vst [vmem:[%s2238_s5 + $0x38] sm:$0xff] %v1935_v7 }
 0x2c4   :  { %1399 = vsyncpa [#allocation3], 1 }
 0x2c5   :  { %1400 = vsyncpa [#allocation5], 1 }
 0x2c6   :  { %1401 = vsyncpa [#allocation8], 1 }

</bundles_post_ra>
